<compile_context>
chip_gen: v7x
topology: tpu7x:2x2x1
jax: 0.10.0
libtpu: 0.0.40
codegen_flags: <defaults>
</compile_context>

<pallas_src>
import functools

import jax
import jax.numpy as jnp
from jax import lax
from jax.experimental import pallas as pl
from jax.experimental.pallas import tpu as pltpu


def rnn_v2_kernel(x_ref, w_ih_ref, w_hh_ref, b_ref,
                  w1_ref, b1_ref, w2_ref, b2_ref, out_ref,
                  *, hidden_size, seq_len):
    """Whole forward pass in one kernel invocation.

    x_ref:    (B, T, D)    batch_first input (B already padded to 8 sublanes)
    w_ih_ref: (D, 4H)      LSTM input weights  (PyTorch weight_ih_l0, transposed)
    w_hh_ref: (H, 4H)      LSTM hidden weights (PyTorch weight_hh_l0, transposed)
    b_ref:    (1, 4H)      b_ih + b_hh combined
    w1_ref:   (H, N)       fc1 weight (transposed), b1_ref: (1, N)
    w2_ref:   (N, Opad)    fc2 weight (transposed, lane-padded), b2_ref: (1, Opad)
    out_ref:  (B, Opad)
    """
    H = hidden_size
    T = seq_len
    B = x_ref.shape[0]

    x = x_ref[...]                                   # (B, T, D)
    w_ih = w_ih_ref[...]                             # (D, 4H)
    w_hh = w_hh_ref[...]                             # (H, 4H)
    b = b_ref[...]                                   # (1, 4H)

    # Hoisted input projection: one big matmul, bias folded in once.
    # (B, T, D) . (D, 4H) -> (B, T, 4H)
    xw = lax.dot_general(
        x, w_ih,
        dimension_numbers=(((2,), (0,)), ((), ())),
        preferred_element_type=jnp.float32,
    ) + b                                            # broadcast (1,4H) -> (B,T,4H)

    h = jnp.zeros((B, H), jnp.float32)
    c = jnp.zeros((B, H), jnp.float32)

    # Statically unrolled recurrence: only the h-dependent matmul stays inside.
    for t in range(T):
        gates = xw[:, t, :] + jnp.dot(h, w_hh, preferred_element_type=jnp.float32)  # (B, 4H)
        # PyTorch nn.LSTM gate ordering: i, f, g, o.
        sig = jax.nn.sigmoid(gates)                  # one full-vreg EUP pass
        g = jnp.tanh(gates[:, 2 * H:3 * H])
        i = sig[:, 0 * H:1 * H]
        f = sig[:, 1 * H:2 * H]
        o = sig[:, 3 * H:4 * H]
        c = f * c + i * g
        h = o * jnp.tanh(c)

    # Head: sigmoid(fc2(relu(dropout_{p=0}(fc1(h_T)))))
    z1 = jnp.dot(h, w1_ref[...], preferred_element_type=jnp.float32) + b1_ref[...]
    z1 = jnp.maximum(z1, 0.0)                        # ReLU
    logits = jnp.dot(z1, w2_ref[...], preferred_element_type=jnp.float32) + b2_ref[...]
    out_ref[...] = jax.nn.sigmoid(logits).astype(out_ref.dtype)


def rnn_v2_forward(x_btd, params):
    """x_btd: (B, T, D) batch_first, like the PyTorch module."""
    w_ih_t, w_hh_t, b, w1_t, b1, w2_t, b2 = params
    B, T, D = x_btd.shape
    H = w_hh_t.shape[0]
    O = w2_t.shape[1]

    # Pad batch to a multiple of 8 sublanes (f32 vreg is 8x128).
    B_pad = max(8, ((B + 7) // 8) * 8)
    if B_pad != B:
        x_btd = jnp.pad(x_btd, ((0, B_pad - B), (0, 0), (0, 0)))

    # Pad fc2 output width to 128 lanes for lane-dense stores.
    O_pad = max(128, ((O + 127) // 128) * 128)
    if O_pad != O:
        w2_t = jnp.pad(w2_t, ((0, 0), (0, O_pad - O)))
        b2 = jnp.pad(b2, ((0, 0), (0, O_pad - O)))

    kernel = functools.partial(rnn_v2_kernel, hidden_size=H, seq_len=T)
    vmem = pl.BlockSpec(memory_space=pltpu.MemorySpace.VMEM)
    out = pl.pallas_call(
        kernel,
        out_shape=jax.ShapeDtypeStruct((B_pad, O_pad), jnp.float32),
        in_specs=[vmem] * 8,                         # 8 operands -> 8 specs
        out_specs=vmem,
    )(x_btd, w_ih_t, w_hh_t, b, w1_t, b1, w2_t, b2)
    return out[:B, :O]


def make_params(key, input_size, hidden_size, n_neurons, output_size):
    """Deterministic synthetic parameters (shapes match the PyTorch module)."""
    ks = jax.random.split(key, 8)
    s = 1.0 / jnp.sqrt(hidden_size)
    # PyTorch stores weight_ih_l0 as (4H, D); we keep the transposed (D, 4H).
    w_ih_t = jax.random.uniform(ks[0], (input_size, 4 * hidden_size), jnp.float32, -s, s)
    w_hh_t = jax.random.uniform(ks[1], (hidden_size, 4 * hidden_size), jnp.float32, -s, s)
    b_ih = jax.random.uniform(ks[2], (4 * hidden_size,), jnp.float32, -s, s)
    b_hh = jax.random.uniform(ks[3], (4 * hidden_size,), jnp.float32, -s, s)
    b = (b_ih + b_hh).reshape(1, 4 * hidden_size)
    w1_t = jax.random.uniform(ks[4], (hidden_size, n_neurons), jnp.float32, -s, s)
    b1 = jax.random.uniform(ks[5], (1, n_neurons), jnp.float32, -s, s)
    w2_t = jax.random.uniform(ks[6], (n_neurons, output_size), jnp.float32, -s, s)
    b2 = jax.random.uniform(ks[7], (1, output_size), jnp.float32, -s, s)
    return (w_ih_t, w_hh_t, b, w1_t, b1, w2_t, b2)


def rnn_v2_reference(x_btd, params):
    """Pure-JAX reference implementing the same PyTorch semantics."""
    w_ih_t, w_hh_t, b, w1_t, b1, w2_t, b2 = params
    B = x_btd.shape[0]
    H = w_hh_t.shape[0]

    def step(carry, x_t):
        h, c = carry
        gates = x_t @ w_ih_t + h @ w_hh_t + b
        i = jax.nn.sigmoid(gates[:, 0 * H:1 * H])
        f = jax.nn.sigmoid(gates[:, 1 * H:2 * H])
        g = jnp.tanh(gates[:, 2 * H:3 * H])
        o = jax.nn.sigmoid(gates[:, 3 * H:4 * H])
        c = f * c + i * g
        h = o * jnp.tanh(c)
        return (h, c), None

    h0 = jnp.zeros((B, H), jnp.float32)
    c0 = jnp.zeros((B, H), jnp.float32)
    (h_T, _), _ = lax.scan(step, (h0, c0), jnp.transpose(x_btd, (1, 0, 2)))
    z1 = jnp.maximum(h_T @ w1_t + b1, 0.0)
    return jax.nn.sigmoid(z1 @ w2_t + b2)


if __name__ == "__main__":
    # Small shapes consistent with the module: batch=4, seq=8, input=8,
    # hidden=32, n_neurons=32, output=4, num_layers=1, dropout=0.0, relu.
    B, T, D = 4, 8, 8
    H, N, O = 32, 32, 4

    key = jax.random.PRNGKey(0)
    kx, kp = jax.random.split(key)
    x = jax.random.normal(kx, (B, T, D), jnp.float32)
    params = make_params(kp, D, H, N, O)

    out = rnn_v2_forward(x, params)
    out = jax.block_until_ready(out)

    ref = rnn_v2_reference(x, params)
    assert out.shape == (B, O)
    assert jnp.allclose(out, ref, atol=1e-5, rtol=1e-5), "mismatch vs reference"

    print("KERNEL_OK")
</pallas_src>

<mosaic_0001>
module attributes {stable_mosaic.version = 11 : i64} {
  func.func @rnn_v2_kernel(%arg0: memref<8x8x8xf32, #tpu.memory_space<vmem>>, %arg1: memref<8x128xf32, #tpu.memory_space<vmem>>, %arg2: memref<32x128xf32, #tpu.memory_space<vmem>>, %arg3: memref<1x128xf32, #tpu.memory_space<vmem>>, %arg4: memref<32x32xf32, #tpu.memory_space<vmem>>, %arg5: memref<1x32xf32, #tpu.memory_space<vmem>>, %arg6: memref<32x128xf32, #tpu.memory_space<vmem>>, %arg7: memref<1x128xf32, #tpu.memory_space<vmem>>, %arg8: memref<8x128xf32, #tpu.memory_space<vmem>>) attributes {dimension_semantics = [], scalar_prefetch = 0 : i64, scratch_operands = 0 : i64, tpu.core_type = #tpu.core_type<tc>} {
    %c0 = arith.constant 0 : index
    %c0_0 = arith.constant 0 : index
    %c0_1 = arith.constant 0 : index
    %0 = vector.load %arg0[%c0, %c0_0, %c0_1] : memref<8x8x8xf32, #tpu.memory_space<vmem>>, vector<8x8x8xf32>
    %c0_2 = arith.constant 0 : index
    %c0_3 = arith.constant 0 : index
    %1 = vector.load %arg1[%c0_2, %c0_3] : memref<8x128xf32, #tpu.memory_space<vmem>>, vector<8x128xf32>
    %c0_4 = arith.constant 0 : index
    %c0_5 = arith.constant 0 : index
    %2 = vector.load %arg2[%c0_4, %c0_5] : memref<32x128xf32, #tpu.memory_space<vmem>>, vector<32x128xf32>
    %c0_6 = arith.constant 0 : index
    %c0_7 = arith.constant 0 : index
    %3 = vector.load %arg3[%c0_6, %c0_7] : memref<1x128xf32, #tpu.memory_space<vmem>>, vector<1x128xf32>
    %cst = arith.constant dense<0.000000e+00> : vector<8x8x128xf32>
    %4 = tpu.matmul %0, %1, %cst {dimension_numbers = #tpu.dot_dimension_numbers<[2], [0], [0, 1], [1], [0, 0, 0, 1, 1, 1], [], []>} : vector<8x8x8xf32>, vector<8x128xf32>, vector<8x8x128xf32> -> vector<8x8x128xf32>
    %5 = vector.shape_cast %3 : vector<1x128xf32> to vector<1x1x128xf32>
    %6 = vector.broadcast %5 : vector<1x1x128xf32> to vector<8x8x128xf32>
    %7 = arith.addf %4, %6 : vector<8x8x128xf32>
    %cst_8 = arith.constant 0.000000e+00 : f32
    %8 = vector.broadcast %cst_8 : f32 to vector<8x32xf32>
    %cst_9 = arith.constant 0.000000e+00 : f32
    %9 = vector.broadcast %cst_9 : f32 to vector<8x32xf32>
    %10 = vector.extract_strided_slice %7 {offsets = [0, 0, 0], sizes = [8, 1, 128], strides = [1, 1, 1]} : vector<8x8x128xf32> to vector<8x1x128xf32>
    %11 = vector.shape_cast %10 : vector<8x1x128xf32> to vector<8x128xf32>
    %cst_10 = arith.constant dense<0.000000e+00> : vector<8x128xf32>
    %12 = tpu.matmul %8, %2, %cst_10 {dimension_numbers = #tpu.dot_dimension_numbers<[1], [0], [0], [1], [0, 0, 1, 1], [], []>} : vector<8x32xf32>, vector<32x128xf32>, vector<8x128xf32> -> vector<8x128xf32>
    %13 = arith.addf %11, %12 : vector<8x128xf32>
    %14 = arith.negf %13 : vector<8x128xf32>
    %15 = math.exp %14 : vector<8x128xf32>
    %cst_11 = arith.constant 1.000000e+00 : f32
    %16 = vector.broadcast %cst_11 : f32 to vector<8x128xf32>
    %17 = arith.addf %16, %15 : vector<8x128xf32>
    %18 = arith.divf %16, %17 : vector<8x128xf32>
    %19 = vector.extract_strided_slice %13 {offsets = [0, 64], sizes = [8, 32], strides = [1, 1]} : vector<8x128xf32> to vector<8x32xf32>
    %20 = math.tanh %19 : vector<8x32xf32>
    %21 = vector.extract_strided_slice %18 {offsets = [0, 0], sizes = [8, 32], strides = [1, 1]} : vector<8x128xf32> to vector<8x32xf32>
    %22 = vector.extract_strided_slice %18 {offsets = [0, 32], sizes = [8, 32], strides = [1, 1]} : vector<8x128xf32> to vector<8x32xf32>
    %23 = vector.extract_strided_slice %18 {offsets = [0, 96], sizes = [8, 32], strides = [1, 1]} : vector<8x128xf32> to vector<8x32xf32>
    %24 = arith.mulf %22, %9 : vector<8x32xf32>
    %25 = arith.mulf %21, %20 : vector<8x32xf32>
    %26 = arith.addf %24, %25 : vector<8x32xf32>
    %27 = math.tanh %26 : vector<8x32xf32>
    %28 = arith.mulf %23, %27 : vector<8x32xf32>
    %29 = vector.extract_strided_slice %7 {offsets = [0, 1, 0], sizes = [8, 1, 128], strides = [1, 1, 1]} : vector<8x8x128xf32> to vector<8x1x128xf32>
    %30 = vector.shape_cast %29 : vector<8x1x128xf32> to vector<8x128xf32>
    %cst_12 = arith.constant dense<0.000000e+00> : vector<8x128xf32>
    %31 = tpu.matmul %28, %2, %cst_12 {dimension_numbers = #tpu.dot_dimension_numbers<[1], [0], [0], [1], [0, 0, 1, 1], [], []>} : vector<8x32xf32>, vector<32x128xf32>, vector<8x128xf32> -> vector<8x128xf32>
    %32 = arith.addf %30, %31 : vector<8x128xf32>
    %33 = arith.negf %32 : vector<8x128xf32>
    %34 = math.exp %33 : vector<8x128xf32>
    %cst_13 = arith.constant 1.000000e+00 : f32
    %35 = vector.broadcast %cst_13 : f32 to vector<8x128xf32>
    %36 = arith.addf %35, %34 : vector<8x128xf32>
    %37 = arith.divf %35, %36 : vector<8x128xf32>
    %38 = vector.extract_strided_slice %32 {offsets = [0, 64], sizes = [8, 32], strides = [1, 1]} : vector<8x128xf32> to vector<8x32xf32>
    %39 = math.tanh %38 : vector<8x32xf32>
    %40 = vector.extract_strided_slice %37 {offsets = [0, 0], sizes = [8, 32], strides = [1, 1]} : vector<8x128xf32> to vector<8x32xf32>
    %41 = vector.extract_strided_slice %37 {offsets = [0, 32], sizes = [8, 32], strides = [1, 1]} : vector<8x128xf32> to vector<8x32xf32>
    %42 = vector.extract_strided_slice %37 {offsets = [0, 96], sizes = [8, 32], strides = [1, 1]} : vector<8x128xf32> to vector<8x32xf32>
    %43 = arith.mulf %41, %26 : vector<8x32xf32>
    %44 = arith.mulf %40, %39 : vector<8x32xf32>
    %45 = arith.addf %43, %44 : vector<8x32xf32>
    %46 = math.tanh %45 : vector<8x32xf32>
    %47 = arith.mulf %42, %46 : vector<8x32xf32>
    %48 = vector.extract_strided_slice %7 {offsets = [0, 2, 0], sizes = [8, 1, 128], strides = [1, 1, 1]} : vector<8x8x128xf32> to vector<8x1x128xf32>
    %49 = vector.shape_cast %48 : vector<8x1x128xf32> to vector<8x128xf32>
    %cst_14 = arith.constant dense<0.000000e+00> : vector<8x128xf32>
    %50 = tpu.matmul %47, %2, %cst_14 {dimension_numbers = #tpu.dot_dimension_numbers<[1], [0], [0], [1], [0, 0, 1, 1], [], []>} : vector<8x32xf32>, vector<32x128xf32>, vector<8x128xf32> -> vector<8x128xf32>
    %51 = arith.addf %49, %50 : vector<8x128xf32>
    %52 = arith.negf %51 : vector<8x128xf32>
    %53 = math.exp %52 : vector<8x128xf32>
    %cst_15 = arith.constant 1.000000e+00 : f32
    %54 = vector.broadcast %cst_15 : f32 to vector<8x128xf32>
    %55 = arith.addf %54, %53 : vector<8x128xf32>
    %56 = arith.divf %54, %55 : vector<8x128xf32>
    %57 = vector.extract_strided_slice %51 {offsets = [0, 64], sizes = [8, 32], strides = [1, 1]} : vector<8x128xf32> to vector<8x32xf32>
    %58 = math.tanh %57 : vector<8x32xf32>
    %59 = vector.extract_strided_slice %56 {offsets = [0, 0], sizes = [8, 32], strides = [1, 1]} : vector<8x128xf32> to vector<8x32xf32>
    %60 = vector.extract_strided_slice %56 {offsets = [0, 32], sizes = [8, 32], strides = [1, 1]} : vector<8x128xf32> to vector<8x32xf32>
    %61 = vector.extract_strided_slice %56 {offsets = [0, 96], sizes = [8, 32], strides = [1, 1]} : vector<8x128xf32> to vector<8x32xf32>
    %62 = arith.mulf %60, %45 : vector<8x32xf32>
    %63 = arith.mulf %59, %58 : vector<8x32xf32>
    %64 = arith.addf %62, %63 : vector<8x32xf32>
    %65 = math.tanh %64 : vector<8x32xf32>
    %66 = arith.mulf %61, %65 : vector<8x32xf32>
    %67 = vector.extract_strided_slice %7 {offsets = [0, 3, 0], sizes = [8, 1, 128], strides = [1, 1, 1]} : vector<8x8x128xf32> to vector<8x1x128xf32>
    %68 = vector.shape_cast %67 : vector<8x1x128xf32> to vector<8x128xf32>
    %cst_16 = arith.constant dense<0.000000e+00> : vector<8x128xf32>
    %69 = tpu.matmul %66, %2, %cst_16 {dimension_numbers = #tpu.dot_dimension_numbers<[1], [0], [0], [1], [0, 0, 1, 1], [], []>} : vector<8x32xf32>, vector<32x128xf32>, vector<8x128xf32> -> vector<8x128xf32>
    %70 = arith.addf %68, %69 : vector<8x128xf32>
    %71 = arith.negf %70 : vector<8x128xf32>
    %72 = math.exp %71 : vector<8x128xf32>
    %cst_17 = arith.constant 1.000000e+00 : f32
    %73 = vector.broadcast %cst_17 : f32 to vector<8x128xf32>
    %74 = arith.addf %73, %72 : vector<8x128xf32>
    %75 = arith.divf %73, %74 : vector<8x128xf32>
    %76 = vector.extract_strided_slice %70 {offsets = [0, 64], sizes = [8, 32], strides = [1, 1]} : vector<8x128xf32> to vector<8x32xf32>
    %77 = math.tanh %76 : vector<8x32xf32>
    %78 = vector.extract_strided_slice %75 {offsets = [0, 0], sizes = [8, 32], strides = [1, 1]} : vector<8x128xf32> to vector<8x32xf32>
    %79 = vector.extract_strided_slice %75 {offsets = [0, 32], sizes = [8, 32], strides = [1, 1]} : vector<8x128xf32> to vector<8x32xf32>
    %80 = vector.extract_strided_slice %75 {offsets = [0, 96], sizes = [8, 32], strides = [1, 1]} : vector<8x128xf32> to vector<8x32xf32>
    %81 = arith.mulf %79, %64 : vector<8x32xf32>
    %82 = arith.mulf %78, %77 : vector<8x32xf32>
    %83 = arith.addf %81, %82 : vector<8x32xf32>
    %84 = math.tanh %83 : vector<8x32xf32>
    %85 = arith.mulf %80, %84 : vector<8x32xf32>
    %86 = vector.extract_strided_slice %7 {offsets = [0, 4, 0], sizes = [8, 1, 128], strides = [1, 1, 1]} : vector<8x8x128xf32> to vector<8x1x128xf32>
    %87 = vector.shape_cast %86 : vector<8x1x128xf32> to vector<8x128xf32>
    %cst_18 = arith.constant dense<0.000000e+00> : vector<8x128xf32>
    %88 = tpu.matmul %85, %2, %cst_18 {dimension_numbers = #tpu.dot_dimension_numbers<[1], [0], [0], [1], [0, 0, 1, 1], [], []>} : vector<8x32xf32>, vector<32x128xf32>, vector<8x128xf32> -> vector<8x128xf32>
    %89 = arith.addf %87, %88 : vector<8x128xf32>
    %90 = arith.negf %89 : vector<8x128xf32>
    %91 = math.exp %90 : vector<8x128xf32>
    %cst_19 = arith.constant 1.000000e+00 : f32
    %92 = vector.broadcast %cst_19 : f32 to vector<8x128xf32>
    %93 = arith.addf %92, %91 : vector<8x128xf32>
    %94 = arith.divf %92, %93 : vector<8x128xf32>
    %95 = vector.extract_strided_slice %89 {offsets = [0, 64], sizes = [8, 32], strides = [1, 1]} : vector<8x128xf32> to vector<8x32xf32>
    %96 = math.tanh %95 : vector<8x32xf32>
    %97 = vector.extract_strided_slice %94 {offsets = [0, 0], sizes = [8, 32], strides = [1, 1]} : vector<8x128xf32> to vector<8x32xf32>
    %98 = vector.extract_strided_slice %94 {offsets = [0, 32], sizes = [8, 32], strides = [1, 1]} : vector<8x128xf32> to vector<8x32xf32>
    %99 = vector.extract_strided_slice %94 {offsets = [0, 96], sizes = [8, 32], strides = [1, 1]} : vector<8x128xf32> to vector<8x32xf32>
    %100 = arith.mulf %98, %83 : vector<8x32xf32>
    %101 = arith.mulf %97, %96 : vector<8x32xf32>
    %102 = arith.addf %100, %101 : vector<8x32xf32>
    %103 = math.tanh %102 : vector<8x32xf32>
    %104 = arith.mulf %99, %103 : vector<8x32xf32>
    %105 = vector.extract_strided_slice %7 {offsets = [0, 5, 0], sizes = [8, 1, 128], strides = [1, 1, 1]} : vector<8x8x128xf32> to vector<8x1x128xf32>
    %106 = vector.shape_cast %105 : vector<8x1x128xf32> to vector<8x128xf32>
    %cst_20 = arith.constant dense<0.000000e+00> : vector<8x128xf32>
    %107 = tpu.matmul %104, %2, %cst_20 {dimension_numbers = #tpu.dot_dimension_numbers<[1], [0], [0], [1], [0, 0, 1, 1], [], []>} : vector<8x32xf32>, vector<32x128xf32>, vector<8x128xf32> -> vector<8x128xf32>
    %108 = arith.addf %106, %107 : vector<8x128xf32>
    %109 = arith.negf %108 : vector<8x128xf32>
    %110 = math.exp %109 : vector<8x128xf32>
    %cst_21 = arith.constant 1.000000e+00 : f32
    %111 = vector.broadcast %cst_21 : f32 to vector<8x128xf32>
    %112 = arith.addf %111, %110 : vector<8x128xf32>
    %113 = arith.divf %111, %112 : vector<8x128xf32>
    %114 = vector.extract_strided_slice %108 {offsets = [0, 64], sizes = [8, 32], strides = [1, 1]} : vector<8x128xf32> to vector<8x32xf32>
    %115 = math.tanh %114 : vector<8x32xf32>
    %116 = vector.extract_strided_slice %113 {offsets = [0, 0], sizes = [8, 32], strides = [1, 1]} : vector<8x128xf32> to vector<8x32xf32>
    %117 = vector.extract_strided_slice %113 {offsets = [0, 32], sizes = [8, 32], strides = [1, 1]} : vector<8x128xf32> to vector<8x32xf32>
    %118 = vector.extract_strided_slice %113 {offsets = [0, 96], sizes = [8, 32], strides = [1, 1]} : vector<8x128xf32> to vector<8x32xf32>
    %119 = arith.mulf %117, %102 : vector<8x32xf32>
    %120 = arith.mulf %116, %115 : vector<8x32xf32>
    %121 = arith.addf %119, %120 : vector<8x32xf32>
    %122 = math.tanh %121 : vector<8x32xf32>
    %123 = arith.mulf %118, %122 : vector<8x32xf32>
    %124 = vector.extract_strided_slice %7 {offsets = [0, 6, 0], sizes = [8, 1, 128], strides = [1, 1, 1]} : vector<8x8x128xf32> to vector<8x1x128xf32>
    %125 = vector.shape_cast %124 : vector<8x1x128xf32> to vector<8x128xf32>
    %cst_22 = arith.constant dense<0.000000e+00> : vector<8x128xf32>
    %126 = tpu.matmul %123, %2, %cst_22 {dimension_numbers = #tpu.dot_dimension_numbers<[1], [0], [0], [1], [0, 0, 1, 1], [], []>} : vector<8x32xf32>, vector<32x128xf32>, vector<8x128xf32> -> vector<8x128xf32>
    %127 = arith.addf %125, %126 : vector<8x128xf32>
    %128 = arith.negf %127 : vector<8x128xf32>
    %129 = math.exp %128 : vector<8x128xf32>
    %cst_23 = arith.constant 1.000000e+00 : f32
    %130 = vector.broadcast %cst_23 : f32 to vector<8x128xf32>
    %131 = arith.addf %130, %129 : vector<8x128xf32>
    %132 = arith.divf %130, %131 : vector<8x128xf32>
    %133 = vector.extract_strided_slice %127 {offsets = [0, 64], sizes = [8, 32], strides = [1, 1]} : vector<8x128xf32> to vector<8x32xf32>
    %134 = math.tanh %133 : vector<8x32xf32>
    %135 = vector.extract_strided_slice %132 {offsets = [0, 0], sizes = [8, 32], strides = [1, 1]} : vector<8x128xf32> to vector<8x32xf32>
    %136 = vector.extract_strided_slice %132 {offsets = [0, 32], sizes = [8, 32], strides = [1, 1]} : vector<8x128xf32> to vector<8x32xf32>
    %137 = vector.extract_strided_slice %132 {offsets = [0, 96], sizes = [8, 32], strides = [1, 1]} : vector<8x128xf32> to vector<8x32xf32>
    %138 = arith.mulf %136, %121 : vector<8x32xf32>
    %139 = arith.mulf %135, %134 : vector<8x32xf32>
    %140 = arith.addf %138, %139 : vector<8x32xf32>
    %141 = math.tanh %140 : vector<8x32xf32>
    %142 = arith.mulf %137, %141 : vector<8x32xf32>
    %143 = vector.extract_strided_slice %7 {offsets = [0, 7, 0], sizes = [8, 1, 128], strides = [1, 1, 1]} : vector<8x8x128xf32> to vector<8x1x128xf32>
    %144 = vector.shape_cast %143 : vector<8x1x128xf32> to vector<8x128xf32>
    %cst_24 = arith.constant dense<0.000000e+00> : vector<8x128xf32>
    %145 = tpu.matmul %142, %2, %cst_24 {dimension_numbers = #tpu.dot_dimension_numbers<[1], [0], [0], [1], [0, 0, 1, 1], [], []>} : vector<8x32xf32>, vector<32x128xf32>, vector<8x128xf32> -> vector<8x128xf32>
    %146 = arith.addf %144, %145 : vector<8x128xf32>
    %147 = arith.negf %146 : vector<8x128xf32>
    %148 = math.exp %147 : vector<8x128xf32>
    %cst_25 = arith.constant 1.000000e+00 : f32
    %149 = vector.broadcast %cst_25 : f32 to vector<8x128xf32>
    %150 = arith.addf %149, %148 : vector<8x128xf32>
    %151 = arith.divf %149, %150 : vector<8x128xf32>
    %152 = vector.extract_strided_slice %146 {offsets = [0, 64], sizes = [8, 32], strides = [1, 1]} : vector<8x128xf32> to vector<8x32xf32>
    %153 = math.tanh %152 : vector<8x32xf32>
    %154 = vector.extract_strided_slice %151 {offsets = [0, 0], sizes = [8, 32], strides = [1, 1]} : vector<8x128xf32> to vector<8x32xf32>
    %155 = vector.extract_strided_slice %151 {offsets = [0, 32], sizes = [8, 32], strides = [1, 1]} : vector<8x128xf32> to vector<8x32xf32>
    %156 = vector.extract_strided_slice %151 {offsets = [0, 96], sizes = [8, 32], strides = [1, 1]} : vector<8x128xf32> to vector<8x32xf32>
    %157 = arith.mulf %155, %140 : vector<8x32xf32>
    %158 = arith.mulf %154, %153 : vector<8x32xf32>
    %159 = arith.addf %157, %158 : vector<8x32xf32>
    %160 = math.tanh %159 : vector<8x32xf32>
    %161 = arith.mulf %156, %160 : vector<8x32xf32>
    %c0_26 = arith.constant 0 : index
    %c0_27 = arith.constant 0 : index
    %162 = vector.load %arg4[%c0_26, %c0_27] : memref<32x32xf32, #tpu.memory_space<vmem>>, vector<32x32xf32>
    %cst_28 = arith.constant dense<0.000000e+00> : vector<8x32xf32>
    %163 = tpu.matmul %161, %162, %cst_28 {dimension_numbers = #tpu.dot_dimension_numbers<[1], [0], [0], [1], [0, 0, 1, 1], [], []>} : vector<8x32xf32>, vector<32x32xf32>, vector<8x32xf32> -> vector<8x32xf32>
    %c0_29 = arith.constant 0 : index
    %c0_30 = arith.constant 0 : index
    %164 = vector.load %arg5[%c0_29, %c0_30] : memref<1x32xf32, #tpu.memory_space<vmem>>, vector<1x32xf32>
    %165 = vector.broadcast %164 : vector<1x32xf32> to vector<8x32xf32>
    %166 = arith.addf %163, %165 : vector<8x32xf32>
    %cst_31 = arith.constant 0.000000e+00 : f32
    %167 = vector.broadcast %cst_31 : f32 to vector<8x32xf32>
    %168 = arith.maximumf %166, %167 : vector<8x32xf32>
    %c0_32 = arith.constant 0 : index
    %c0_33 = arith.constant 0 : index
    %169 = vector.load %arg6[%c0_32, %c0_33] : memref<32x128xf32, #tpu.memory_space<vmem>>, vector<32x128xf32>
    %cst_34 = arith.constant dense<0.000000e+00> : vector<8x128xf32>
    %170 = tpu.matmul %168, %169, %cst_34 {dimension_numbers = #tpu.dot_dimension_numbers<[1], [0], [0], [1], [0, 0, 1, 1], [], []>} : vector<8x32xf32>, vector<32x128xf32>, vector<8x128xf32> -> vector<8x128xf32>
    %c0_35 = arith.constant 0 : index
    %c0_36 = arith.constant 0 : index
    %171 = vector.load %arg7[%c0_35, %c0_36] : memref<1x128xf32, #tpu.memory_space<vmem>>, vector<1x128xf32>
    %172 = vector.broadcast %171 : vector<1x128xf32> to vector<8x128xf32>
    %173 = arith.addf %170, %172 : vector<8x128xf32>
    %174 = arith.negf %173 : vector<8x128xf32>
    %175 = math.exp %174 : vector<8x128xf32>
    %cst_37 = arith.constant 1.000000e+00 : f32
    %176 = vector.broadcast %cst_37 : f32 to vector<8x128xf32>
    %177 = arith.addf %176, %175 : vector<8x128xf32>
    %178 = arith.divf %176, %177 : vector<8x128xf32>
    %c0_38 = arith.constant 0 : index
    %c0_39 = arith.constant 0 : index
    %179 = vector.load %arg8[%c0_38, %c0_39] : memref<8x128xf32, #tpu.memory_space<vmem>>, vector<8x128xf32>
    tpu.vector_store %arg8[%c0_38, %c0_39], %178 {strides = array<i32>} : memref<8x128xf32, #tpu.memory_space<vmem>>, vector<8x128xf32>,
    return
  }
}

</mosaic_0001>

<bundles_post_ra>
// kernel: tpu_custom_call.1
= control target key start
LH: loop header
LB: loop body
LE: loop exit
PB: predicated region body
PF: predicated region fallthrough
CT: control target
= control target key end

     0   :  { %13 = vsyncpa [#allocation3], 0  ;;  %s5217_s0 = inlined_call_operand.hbm [shape: f32[8,8,8], index: 0, kind: input, shape index: {}]   ;;  %s5218_s1 = inlined_call_operand.hbm [shape: f32[8,128], index: 1, kind: input, shape index: {}]   ;;  %s5219_s2 = inlined_call_operand.hbm [shape: f32[32,128], index: 2, kind: input, shape index: {}]   ;;  %s5220_s3 = inlined_call_operand.vmem [shape: f32[1,128], index: 3, kind: input, shape index: {}]   ;;  %s5221_s4 = inlined_call_operand.hbm [shape: f32[32,32], index: 4, kind: input, shape index: {}]   ;;  %s5222_s5 = inlined_call_operand.vmem [shape: f32[1,32], index: 5, kind: input, shape index: {}]   ;;  %s5223_s6 = inlined_call_operand.hbm [shape: f32[32,128], index: 6, kind: input, shape index: {}]   ;;  %s5224_s7 = inlined_call_operand.vmem [shape: f32[1,128], index: 7, kind: input, shape index: {}]   ;;  %s5225_s8 = inlined_call_operand.hbm [shape: f32[8,128], index: 8, kind: output, shape index: {}]  }
   0x1   :  { %14 = vsyncpa [#allocation6], 0 }
   0x2   :  { %15 = vsyncpa [#allocation9], 0 }
   0x3   :  { %16 = vsyncpa [#allocation4], 0  ;;  %s4108_s27 = smov [#allocation5]   ;;  %s3968_s9 = scalar_lea.hbm %s5218_s1, 128 }
   0x4   :  { %s35_s28 = sshll.u32 %s4108_s27, 4  ;;  %p3969_p0 = scmp.ne.s32.totalorder %s5218_s1, %s3968_s9  ;;  %s36_s28 = int_to_ptr.vmem [resolvable:$true] %s35_s28 }
   0x5   :  { %p3972_p1 = scmp.lt.u32.totalorder %s3968_s9, %s5218_s1 }
   0x7   :  { %p3974_p2 = pnand %p3972_p1, %p3969_p0 }
   0x9   :  { %3977 = shalt.err (!%p3974_p2)
}
   0xa   :  { %s3978_s14 = scalar_lea.vmem %s36_s28, 128  ;;  %p3983_p4 = scmp.lt.s32.totalorder %s36_s28, %s36_s28 }
   0xb   :  { %p3979_p3 = scmp.ne.s32.totalorder %s36_s28, %s3978_s14  ;;  %p3984_p5 = scmp.lt.s32.totalorder %s3978_s14, %s3978_s14 }
   0xd   :  { %p3985_p6 = por %p3984_p5, %p3983_p4 }
   0xf   :  { %p3986_p7 = pnand %p3985_p6, %p3979_p3 }
  0x11   :  { %3989 = shalt.err (!%p3986_p7)
}
  0x12   :  { %38 = dma.hbm_to_vmem [thread:$0]  %s5218_s1, 128, %s36_s28, [#allocation6]  }
  0x13   :  { %s4109_s17 = smov [#allocation8]   ;;  %s4110_s19 = smov [#allocation2]  }
  0x14   :  { %s58_s18 = sshll.u32 %s4109_s17, 4  ;;  %s22_s20 = sshll.u32 %s4110_s19, 4  ;;  %s59_s18 = int_to_ptr.vmem [resolvable:$true] %s58_s18  ;;  %s23_s20 = int_to_ptr.vmem [resolvable:$true] %s22_s20 }
  0x15   :  { %s3990_s23 = scalar_lea.hbm %s5221_s4, 512 }
  0x16   :  { %p3991_p8 = scmp.ne.s32.totalorder %s5221_s4, %s3990_s23  ;;  %p3994_p9 = scmp.lt.u32.totalorder %s3990_s23, %s5221_s4 }
  0x18   :  { %p3996_p10 = pnand %p3994_p9, %p3991_p8 }
  0x1a   :  { %3999 = shalt.err (!%p3996_p10)
}
  0x1b   :  { %s4000_s1 = scalar_lea.vmem %s59_s18, 512  ;;  %p4005_p12 = scmp.lt.s32.totalorder %s59_s18, %s59_s18 }
  0x1c   :  { %p4001_p11 = scmp.ne.s32.totalorder %s59_s18, %s4000_s1  ;;  %p4006_p13 = scmp.lt.s32.totalorder %s4000_s1, %s4000_s1 }
  0x1e   :  { %p4007_p0 = por %p4006_p13, %p4005_p12 }
  0x20   :  { %p4008_p1 = pnand %p4007_p0, %p4001_p11 }
  0x22   :  { %4011 = shalt.err (!%p4008_p1)
}
  0x23   :  { %s4111_s28 = smov 128   ;;  %s4112_s29 = smov 8  }
  0x24   :  { %64 = dma.hbm_to_vmem [thread:$0]  %s5221_s4, 512, %s59_s18, [#allocation9], %s4111_s28, %s4111_s28, %s4112_s29  }
  0x25   :  { %s4012_s12 = scalar_lea.hbm %s5217_s0, 1024 }
  0x26   :  { %p4013_p2 = scmp.ne.s32.totalorder %s5217_s0, %s4012_s12  ;;  %p4016_p3 = scmp.lt.u32.totalorder %s4012_s12, %s5217_s0 }
  0x28   :  { %p4018_p4 = pnand %p4016_p3, %p4013_p2 }
  0x2a   :  { %4021 = shalt.err (!%p4018_p4)
}
  0x2b   :  { %s4022_s17 = scalar_lea.vmem %s23_s20, 1024  ;;  %p4027_p6 = scmp.lt.s32.totalorder %s23_s20, %s23_s20 }
  0x2c   :  { %p4023_p5 = scmp.ne.s32.totalorder %s23_s20, %s4022_s17  ;;  %p4028_p7 = scmp.lt.s32.totalorder %s4022_s17, %s4022_s17 }
  0x2e   :  { %p4029_p8 = por %p4028_p7, %p4027_p6 }
  0x30   :  { %p4030_p9 = pnand %p4029_p8, %p4023_p5 }
  0x32   :  { %4033 = shalt.err (!%p4030_p9)
}
  0x33   :  { %28 = dma.hbm_to_vmem [thread:$0]  %s5217_s0, 1024, %s23_s20, [#allocation3], %s4111_s28, %s4111_s28, %s4112_s29  }
  0x34   :  { %s4113_s19 = smov [#allocation7]   ;;  %s4114_s22 = smov [#allocation10]  }
  0x35   :  { %s44_s21 = sshll.u32 %s4113_s19, 4  ;;  %s72_s23 = sshll.u32 %s4114_s22, 4  ;;  %s45_s21 = int_to_ptr.vmem [resolvable:$true] %s44_s21  ;;  %s73_s23 = int_to_ptr.vmem [resolvable:$true] %s72_s23 }
  0x36   :  { %s4034_s26 = scalar_lea.hbm %s5219_s2, 512 }
  0x37   :  { %p4035_p10 = scmp.ne.s32.totalorder %s5219_s2, %s4034_s26  ;;  %p4038_p11 = scmp.lt.u32.totalorder %s4034_s26, %s5219_s2 }
  0x39   :  { %p4040_p12 = pnand %p4038_p11, %p4035_p10 }
  0x3b   :  { %4043 = shalt.err (!%p4040_p12)
}
  0x3c   :  { %s4044_s0 = scalar_lea.vmem %s45_s21, 512  ;;  %p4049_p0 = scmp.lt.s32.totalorder %s45_s21, %s45_s21 }
  0x3d   :  { %p4045_p13 = scmp.ne.s32.totalorder %s45_s21, %s4044_s0  ;;  %p4050_p1 = scmp.lt.s32.totalorder %s4044_s0, %s4044_s0 }
  0x3f   :  { %p4051_p2 = por %p4050_p1, %p4049_p0 }
  0x41   :  { %p4052_p3 = pnand %p4051_p2, %p4045_p13 }
  0x43   :  { %4055 = shalt.err (!%p4052_p3)
}
  0x44   :  { %50 = dma.hbm_to_vmem [thread:$0]  %s5219_s2, 512, %s45_s21, [#allocation6], %s4111_s28, %s4111_s28, %s4112_s29  }
  0x45   :  { %s4056_s13 = scalar_lea.hbm %s5223_s6, 512 }
  0x46   :  { %p4057_p4 = scmp.ne.s32.totalorder %s5223_s6, %s4056_s13  ;;  %p4060_p5 = scmp.lt.u32.totalorder %s4056_s13, %s5223_s6 }
  0x48   :  { %p4062_p6 = pnand %p4060_p5, %p4057_p4 }
  0x4a   :  { %4065 = shalt.err (!%p4062_p6)
}
  0x4b   :  { %s4066_s4 = scalar_lea.vmem %s73_s23, 512  ;;  %p4071_p8 = scmp.lt.s32.totalorder %s73_s23, %s73_s23 }
  0x4c   :  { %p4067_p7 = scmp.ne.s32.totalorder %s73_s23, %s4066_s4  ;;  %p4072_p9 = scmp.lt.s32.totalorder %s4066_s4, %s4066_s4 }
  0x4e   :  { %p4073_p10 = por %p4072_p9, %p4071_p8 }
  0x50   :  { %p4074_p11 = pnand %p4073_p10, %p4067_p7 }
  0x52   :  { %4077 = shalt.err (!%p4074_p11)
}
  0x53   :  { %78 = dma.hbm_to_vmem [thread:$0]  %s5223_s6, 512, %s73_s23, [#allocation9], %s4111_s28, %s4111_s28, %s4112_s29  }
  0x54   :  { %4100 = dma.done.wait [#allocation3], 1024  }
  0x55   :  { %4101 = vsyncadd [#allocation3], 4294966272 }
  0x56   :  { %4102 = dma.done.wait [#allocation6], 640  }
  0x57   :  { %4103 = vsyncadd [#allocation6], 4294966656 }
  0x58   :  { %4104 = dma.done.wait [#allocation9], 1024  }
  0x59   :  { %4105 = vsyncadd [#allocation9], 4294966272  ;;  %v4115_v0 = vmov 0.0|0.0   ;;  %vm4116_vm0 = vmmov 0   ;;  %v4117_v1 = vmov 0.0   ;;  %vm116_vm1 = vcmask 64512  }
  0x5a   :  { %3379 = vmatprep.subr.bf16.mxu1 %v4115_v0  ;;  %3277 = vmatprep.mubr.msk.f32.mxu1 %vm4116_vm0, %v4117_v1  ;;  %v104_v2 = vld [vmem:[#allocation5] sm:$0xff]  ;;  %v97_v4 = vld [vmem:[#allocation2 + $0x8] sm:$0xff]  ;;  %v106_v6 = vld [vmem:[#allocation7 + $0x8] sm:$0xff]  ;;  %s4119_s29 = smov 32   ;;  %vm545_vm2 = vcmask 1041409   ;;  %vm548_vm3 = vcmask 1042434  }
  0x5b   :  { %v96_v3 = vld [vmem:[#allocation2] sm:$0xff]  ;;  %3255 = vmatprep.subr.mxu0 %v104_v2  ;;  %v105_v5 = vld [vmem:[#allocation7] sm:$0xff]  ;;  %v98_v7 = vld [vmem:[#allocation2 + $0x10] sm:$0xff]  ;;  %vm551_vm4 = vcmask 1043459   ;;  %vm554_vm5 = vcmask 1044484   ;;  %vm557_vm6 = vcmask 1045509  }
  0x5c   :  { %3257 = vmatprep.mubr.msk.f32.mxu0 %vm116_vm1, %v96_v3  ;;  %3256 = vmatpush3.msra.mxu0 %v104_v2  ;;  %v4242_v8 = vpack.c.bf16 %v106_v6, %v105_v5  ;;  %v107_v9 = vld [vmem:[#allocation7 + $0x10] sm:$0xff]  ;;  %v108_v10 = vld [vmem:[#allocation7 + $0x18] sm:$0xff]  ;;  %v101_v14 = vld [vmem:[#allocation2 + $0x28] sm:$0xff]  ;;  %vm560_vm7 = vcmask 1046534   ;;  %vm563_vm8 = vcmask 1047559   ;;  %vm246_vm9 = vcmask 261120  }
  0x5d   :  { %3258 = vmatmul.mubr.msk.f32.vlgmr.msra.gmra.mrb[0].mxu0 %vm116_vm1, %v97_v4  ;;  %3391 = vmatprep.subr.bf16.mxu0 %v4115_v0  ;;  %v99_v11 = vld [vmem:[#allocation2 + $0x18] sm:$0xff]  ;;  %v4248_v12 = vpack.c.bf16 %v108_v10, %v107_v9  ;;  %v100_v13 = vld [vmem:[#allocation2 + $0x20] sm:$0xff]  ;;  %v102_v15 = vld [vmem:[#allocation2 + $0x30] sm:$0xff]  ;;  %s4120_s24 = smov [#allocation11]  }
  0x5e   :  { %3381 = vmatpush3.bf16.msra.mxu1 %v4242_v8  ;;  %3260 = vmatprep.mubr.msk.f32.mxu0 %vm116_vm1, %v98_v7  ;;  %v103_v16 = vld [vmem:[#allocation2 + $0x38] sm:$0xff]  ;;  %v3111_v21 = vld [vmem:[%s5220_s3] ss:$0 sm:$0xff]  ;;  %s4118_s3 = smov 64  }
  0x5f   :  { %3382 = vmatprep.subr.bf16.mxu1 %v4115_v0  ;;  %3393 = vmatpush3.bf16.msra.mxu0 %v4242_v8 }
  0x60   :  { %3394 = vmatprep.subr.bf16.mxu0 %v4115_v0 }
  0x61   :  { %3261 = vmatmul.mubr.msk.f32.gmra.mrb[2].mxu0 %vm116_vm1, %v99_v11 }
  0x62   :  { %3384 = vmatpush3.bf16.msra.mxu1 %v4248_v12  ;;  %3263 = vmatprep.mubr.msk.f32.mxu0 %vm116_vm1, %v100_v13 }
  0x63   :  { %3385 = vmatprep.subr.bf16.mxu1 %v4115_v0  ;;  %3396 = vmatpush3.bf16.msra.mxu0 %v4248_v12 }
  0x64   :  { %3403 = vmatprep.subr.bf16.mxu0 %v4115_v0 }
  0x65   :  { %3278 = vmatmul.mubr.f32.vlgmr.msra.gmra.mrb[0].mxu1 %v4117_v1  ;;  %3264 = vmatmul.mubr.msk.f32.gmra.mrb[4].mxu0 %vm116_vm1, %v101_v14 }
  0x66   :  { %3266 = vmatprep.mubr.msk.f32.mxu0 %vm116_vm1, %v102_v15  ;;  %3387 = vmatpush3.bf16.msra.mxu1 %v4242_v8 }
  0x67   :  { %3388 = vmatprep.subr.bf16.mxu1 %v4115_v0  ;;  %3288 = vmatprep.mubr.msk.f32.mxu1 %vm4116_vm0, %v4117_v1 }
  0x69   :  { %3267 = vmatmul.mubr.msk.f32.gmra.mrb[6].mxu0 %vm116_vm1, %v103_v16 }
  0x6a   :  { %3390 = vmatpush3.bf16.msra.mxu1 %v4248_v12  ;;  %3299 = vmatprep.mubr.msk.f32.mxu0 %vm4116_vm0, %v4117_v1 }
  0x6b   :  { %3397 = vmatprep.subr.bf16.mxu1 %v4115_v0 }
 0x130   :  { %v3259_v17 = vpop.f32.mrb[0].mxu0 }
 0x131   :  { %v207_v18 = vpop.f32.mrb[1].mxu0  ;;  %v4276_v27 = vadd.f32 %v3259_v17, %v3111_v21 }
 0x132   :  { %v4274_v24 = vadd.f32 %v3111_v21, %v207_v18 }
 0x134   :  { %v3262_v19 = vpop.f32.mrb[2].mxu0 }
 0x135   :  { %v217_v20 = vpop.f32.mrb[3].mxu0  ;;  %v4278_v30 = vadd.f32 %v3262_v19, %v3111_v21 }
 0x136   :  { %v4281_v34 = vadd.f32 %v3111_v21, %v217_v20 }
 0x138   :  { %v316_v22 = vpop.f32.mrb[0].mxu1  ;;  %v3265_v23 = vpop.f32.mrb[4].mxu0 }
 0x139   :  { %v3279_v25 = vpop.f32.mrb[1].mxu1  ;;  %v227_v26 = vpop.f32.mrb[5].mxu0  ;;  %v321_v28 = vrot.slane %v316_v22, 1  ;;  %v323_v31 = vrot.slane %v316_v22, 3  ;;  %v336_v33 = vadd.f32 %v316_v22, %v4274_v24  ;;  %v322_v35 = vrot.slane %v316_v22, 2 }
 0x13a   :  { %v325_v37 = vrot.slane %v316_v22, 5  ;;  %v4285_v39 = vadd.f32 %v3265_v23, %v3111_v21  ;;  %v4288_v41 = vadd.f32 %v3111_v21, %v227_v26  ;;  %v324_v42 = vrot.slane %v316_v22, 4 }
 0x13b   :  { %v337_v36 = vadd.f32 %v321_v28, %v4276_v27  ;;  %v339_v38 = vadd.f32 %v323_v31, %v4278_v30  ;;  %3452 = vtanh.f32 %v336_v33  ;;  %v338_v40 = vadd.f32 %v322_v35, %v4281_v34 }
 0x13c   :  { %v3268_v29 = vpop.f32.mrb[6].mxu0  ;;  %v341_v44 = vadd.f32 %v325_v37, %v4285_v39  ;;  %v327_v45 = vrot.slane %v316_v22, 7  ;;  %v340_v47 = vadd.f32 %v324_v42, %v4288_v41  ;;  %v326_v48 = vrot.slane %v316_v22, 6 }
 0x13d   :  { %v237_v32 = vpop.f32.mrb[7].mxu0  ;;  %3454 = vtanh.f32 %v337_v36  ;;  %v4290_v43 = vadd.f32 %v3268_v29, %v3111_v21  ;;  %v3120_v59 = vmul.f32 -1.442695, %v336_v33  ;;  %v3121_v60 = vmul.f32 -1.442695, %v337_v36 }
 0x13e   :  { %3456 = vtanh.f32 %v339_v38  ;;  %v4293_v46 = vadd.f32 %v3111_v21, %v237_v32  ;;  %v3122_v61 = vmul.f32 -1.442695, %v338_v40  ;;  %v3123_v62 = vmul.f32 -1.442695, %v339_v38 }
 0x13f   :  { %3458 = vtanh.f32 %v338_v40  ;;  %v343_v49 = vadd.f32 %v327_v45, %v4290_v43  ;;  %v3124_v63 = vmul.f32 -1.442695, %v340_v47  ;;  %v3125_v2 = vmul.f32 -1.442695, %v341_v44 }
 0x140   :  { %3460 = vtanh.f32 %v341_v44  ;;  %v342_v51 = vadd.f32 %v326_v48, %v4293_v46 }
 0x141   :  { %3462 = vtanh.f32 %v340_v47  ;;  %v3127_v7 = vmul.f32 -1.442695, %v343_v49 }
 0x142   :  { %3464 = vtanh.f32 %v343_v49  ;;  %v3126_v4 = vmul.f32 -1.442695, %v342_v51 }
 0x143   :  { %3466 = vtanh.f32 %v342_v51 }
 0x144   :  { %3468 = vpow2.f32 %v3120_v59 }
 0x145   :  { %v3453_v50 = vpop.eup %3452  ;;  %3470 = vpow2.f32 %v3121_v60 }
 0x146   :  { %416 = vrot.lane.b32.xlu1 %v3453_v50, %s4118_s3  ;;  %3472 = vpow2.f32 %v3122_v61 }
 0x147   :  { %v3455_v52 = vpop.eup %3454  ;;  %3474 = vpow2.f32 %v3123_v62 }
 0x148   :  { %418 = vrot.lane.b32.xlu0 %v3455_v52, %s4118_s3  ;;  %v3457_v53 = vpop.eup %3456  ;;  %3476 = vpow2.f32 %v3124_v63 }
 0x149   :  { %v3459_v54 = vpop.eup %3458  ;;  %3478 = vpow2.f32 %v3125_v2 }
 0x14a   :  { %422 = vrot.lane.b32.xlu1 %v3457_v53, %s4118_s3  ;;  %v3461_v55 = vpop.eup %3460  ;;  %3480 = vpow2.f32 %v3126_v4 }
 0x14b   :  { %v3463_v56 = vpop.eup %3462 }
 0x14c   :  { %420 = vrot.lane.b32.xlu0 %v3459_v54, %s4118_s3  ;;  %v3465_v57 = vpop.eup %3464 }
 0x14d   :  { %v3467_v58 = vpop.eup %3466 }
 0x14e   :  { %426 = vrot.lane.b32.xlu1 %v3461_v55, %s4118_s3  ;;  %v3469_v3 = vpop.eup %3468 }
 0x14f   :  { %v368_v5 = vadd.f32 1.0, %v3469_v3  ;;  %v3471_v6 = vpop.eup %3470 }
 0x150   :  { %424 = vrot.lane.b32.xlu0 %v3463_v56, %s4118_s3  ;;  %v3473_v9 = vpop.eup %3472  ;;  %v369_v10 = vadd.f32 1.0, %v3471_v6 }
 0x151   :  { %3482 = vrcp.f32 %v368_v5  ;;  %v3475_v11 = vpop.eup %3474  ;;  %v370_v13 = vadd.f32 1.0, %v3473_v9 }
 0x152   :  { %430 = vrot.lane.b32.xlu1 %v3465_v57, %s4118_s3  ;;  %3484 = vpow2.f32 %v3127_v7  ;;  %v3477_v14 = vpop.eup %3476  ;;  %v371_v15 = vadd.f32 1.0, %v3475_v11 }
 0x153   :  { %3486 = vrcp.f32 %v369_v10  ;;  %v3479_v16 = vpop.eup %3478  ;;  %v372_v17 = vadd.f32 1.0, %v3477_v14 }
 0x154   :  { %428 = vrot.lane.b32.xlu0 %v3467_v58, %s4118_s3  ;;  %3488 = vrcp.f32 %v370_v13  ;;  %v3481_v18 = vpop.eup %3480  ;;  %v373_v19 = vadd.f32 1.0, %v3479_v16 }
 0x155   :  { %3490 = vrcp.f32 %v371_v15  ;;  %v374_v22 = vadd.f32 1.0, %v3481_v18 }
 0x156   :  { %3492 = vrcp.f32 %v372_v17 }
 0x157   :  { %3494 = vrcp.f32 %v373_v19 }
 0x158   :  { %3496 = vrcp.f32 %v374_v22 }
 0x15b   :  { %v4306_v20 = vpop.eup %3482 }
 0x15c   :  { %v3485_v23 = vpop.eup %3484  ;;  %v400_v55 = vmul.f32 0.0, %v4306_v20 }
 0x15d   :  { %v4310_v28 = vpop.eup %3486  ;;  %v375_v31 = vadd.f32 1.0, %v3485_v23 }
 0x15e   :  { %v4313_v33 = vpop.eup %3488  ;;  %v401_v58 = vmul.f32 0.0, %v4310_v28 }
 0x15f   :  { %3498 = vrcp.f32 %v375_v31  ;;  %v4317_v37 = vpop.eup %3490  ;;  %v402_v61 = vmul.f32 0.0, %v4313_v33 }
 0x160   :  { %v4320_v38 = vpop.eup %3492  ;;  %v403_v2 = vmul.f32 0.0, %v4317_v37 }
 0x161   :  { %v4324_v47 = vpop.eup %3494  ;;  %v404_v3 = vmul.f32 0.0, %v4320_v38 }
 0x162   :  { %v4328_v48 = vpop.eup %3496  ;;  %v405_v10 = vmul.f32 0.0, %v4324_v47 }
 0x163   :  { %v406_v11 = vmul.f32 0.0, %v4328_v48 }
 0x169   :  { %v4334_v53 = vpop.eup %3498 }
 0x16a   :  { %v407_v18 = vmul.f32 0.0, %v4334_v53 }
 0x1b8   :  { %v417_v21 = vpop.permute.xlu1 %416 }
 0x1b9   :  { %v440_v25 = vmul.f32 %v4306_v20, %v417_v21 }
 0x1ba   :  { %v419_v26 = vpop.permute.xlu0 %418 }
 0x1bb   :  { %456 = vrot.lane.b32.xlu0 %v440_v25, %s4119_s29  ;;  %v441_v32 = vmul.f32 %v4310_v28, %v419_v26 }
 0x1bc   :  { %v423_v29 = vpop.permute.xlu1 %422 }
 0x1bd   :  { %v443_v44 = vmul.f32 %v4317_v37, %v423_v29 }
 0x1be   :  { %v421_v35 = vpop.permute.xlu0 %420 }
 0x1bf   :  { %v442_v36 = vmul.f32 %v4313_v33, %v421_v35  ;;  %458 = vrot.lane.b32.xlu0 %v441_v32, %s4119_s29 }
 0x1c0   :  { %v427_v40 = vpop.permute.xlu1 %426 }
 0x1c1   :  { %460 = vrot.lane.b32.xlu1 %v442_v36, %s4119_s29  ;;  %v445_v50 = vmul.f32 %v4324_v47, %v427_v40 }
 0x1c2   :  { %v425_v42 = vpop.permute.xlu0 %424 }
 0x1c3   :  { %v444_v45 = vmul.f32 %v4320_v38, %v425_v42 }
 0x1c4   :  { %v431_v52 = vpop.permute.xlu1 %430 }
 0x1c5   :  { %462 = vrot.lane.b32.xlu1 %v443_v44, %s4119_s29  ;;  %464 = vrot.lane.b32.xlu0 %v444_v45, %s4119_s29  ;;  %v447_v54 = vmul.f32 %v4334_v53, %v431_v52 }
 0x1c6   :  { %v429_v49 = vpop.permute.xlu0 %428 }
 0x1c7   :  { %v446_v51 = vmul.f32 %v4328_v48, %v429_v49 }
 0x1c9   :  { %466 = vrot.lane.b32.xlu1 %v445_v50, %s4119_s29  ;;  %468 = vrot.lane.b32.xlu0 %v446_v51, %s4119_s29 }
 0x1cd   :  { %470 = vrot.lane.b32.xlu1 %v447_v54, %s4119_s29 }
 0x22d   :  { %v457_v56 = vpop.permute.xlu0 %456 }
 0x22e   :  { %v4339_v57 = vadd.f32 %v457_v56, %v400_v55 }
 0x230   :  { %3500 = vtanh.f32 %v4339_v57 }
 0x231   :  { %v459_v59 = vpop.permute.xlu0 %458 }
 0x232   :  { %v4343_v60 = vadd.f32 %v459_v59, %v401_v58 }
 0x233   :  { %v461_v62 = vpop.permute.xlu1 %460 }
 0x234   :  { %3502 = vtanh.f32 %v4343_v60  ;;  %v4347_v63 = vadd.f32 %v461_v62, %v402_v61 }
 0x236   :  { %3504 = vtanh.f32 %v4347_v63 }
 0x237   :  { %v463_v4 = vpop.permute.xlu1 %462  ;;  %v465_v5 = vpop.permute.xlu0 %464 }
 0x238   :  { %v4352_v6 = vadd.f32 %v463_v4, %v403_v2  ;;  %v4354_v7 = vadd.f32 %v465_v5, %v404_v3 }
 0x23a   :  { %v3501_v9 = vpop.eup %3500  ;;  %3506 = vtanh.f32 %v4352_v6 }
 0x23b   :  { %3508 = vtanh.f32 %v4354_v7  ;;  %v467_v13 = vpop.permute.xlu1 %466  ;;  %v469_v14 = vpop.permute.xlu0 %468  ;;  %504 = vrot.lane.b32.xlu0 %v3501_v9, %s4118_s3 }
 0x23c   :  { %v4361_v15 = vadd.f32 %v467_v13, %v405_v10  ;;  %v4363_v16 = vadd.f32 %v469_v14, %v406_v11 }
 0x23e   :  { %v3503_v17 = vpop.eup %3502  ;;  %3510 = vtanh.f32 %v4361_v15 }
 0x23f   :  { %3512 = vtanh.f32 %v4363_v16  ;;  %v471_v19 = vpop.permute.xlu1 %470  ;;  %506 = vrot.lane.b32.xlu0 %v3503_v17, %s4118_s3 }
 0x240   :  { %v3505_v21 = vpop.eup %3504  ;;  %v4369_v22 = vadd.f32 %v471_v19, %v407_v18 }
 0x241   :  { %508 = vrot.lane.b32.xlu1 %v3505_v21, %s4118_s3 }
 0x242   :  { %3514 = vtanh.f32 %v4369_v22 }
 0x244   :  { %v3507_v23 = vpop.eup %3506 }
 0x245   :  { %v3509_v25 = vpop.eup %3508  ;;  %510 = vrot.lane.b32.xlu1 %v3507_v23, %s4118_s3 }
 0x246   :  { %512 = vrot.lane.b32.xlu0 %v3509_v25, %s4118_s3 }
 0x248   :  { %v3511_v26 = vpop.eup %3510 }
 0x249   :  { %v3513_v29 = vpop.eup %3512  ;;  %514 = vrot.lane.b32.xlu1 %v3511_v26, %s4118_s3 }
 0x24a   :  { %516 = vrot.lane.b32.xlu0 %v3513_v29, %s4118_s3 }
 0x24c   :  { %v3515_v31 = vpop.eup %3514 }
 0x24d   :  { %518 = vrot.lane.b32.xlu1 %v3515_v31, %s4118_s3 }
 0x2ad   :  { %v505_v32 = vpop.permute.xlu0 %504 }
 0x2ae   :  { %v528_v45 = vmul.f32 %v4306_v20, %v505_v32 }
 0x2b1   :  { %v507_v35 = vpop.permute.xlu0 %506 }
 0x2b2   :  { %v529_v36 = vmul.f32 %v4310_v28, %v507_v35 }
 0x2b3   :  { %v509_v40 = vpop.permute.xlu1 %508 }
 0x2b4   :  { %v544_v42 = vrot.slane %v529_v36, 7  ;;  %v530_v44 = vmul.f32 %v4313_v33, %v509_v40 }
 0x2b6   :  { %v547_v49 = vrot.slane %v530_v44, 6  ;;  %v546_v51 = vsel %vm545_vm2, %v544_v42, %v528_v45 }
 0x2b7   :  { %v511_v50 = vpop.permute.xlu1 %510 }
 0x2b8   :  { %v531_v52 = vmul.f32 %v4317_v37, %v511_v50  ;;  %v513_v54 = vpop.permute.xlu0 %512  ;;  %v549_v28 = vsel %vm548_vm3, %v547_v49, %v546_v51 }
 0x2b9   :  { %v532_v55 = vmul.f32 %v4320_v38, %v513_v54 }
 0x2ba   :  { %v550_v56 = vrot.slane %v531_v52, 5 }
 0x2bb   :  { %v553_v58 = vrot.slane %v532_v55, 4  ;;  %v515_v59 = vpop.permute.xlu1 %514 }
 0x2bc   :  { %v552_v33 = vsel %vm551_vm4, %v550_v56, %v549_v28  ;;  %v533_v20 = vmul.f32 %v4324_v47, %v515_v59  ;;  %v517_v61 = vpop.permute.xlu0 %516 }
 0x2bd   :  { %v534_v62 = vmul.f32 %v4328_v48, %v517_v61  ;;  %v555_v37 = vsel %vm554_vm5, %v553_v58, %v552_v33 }
 0x2be   :  { %v556_v2 = vrot.slane %v533_v20, 3 }
 0x2bf   :  { %v559_v3 = vrot.slane %v534_v62, 2  ;;  %v519_v4 = vpop.permute.xlu1 %518 }
 0x2c0   :  { %v535_v38 = vmul.f32 %v4334_v53, %v519_v4  ;;  %v558_v5 = vsel %vm557_vm6, %v556_v2, %v555_v37 }
 0x2c1   :  { %v561_v10 = vsel %vm560_vm7, %v559_v3, %v558_v5 }
 0x2c2   :  { %v562_v9 = vrot.slane %v535_v38, 1 }
 0x2c4   :  { %v564_v47 = vsel %vm563_vm8, %v562_v9, %v561_v10 }
 0x2c5   :  { %565 = vrot.lane.b32.xlu0 %v564_v47, %s4119_s29 }
 0x337   :  { %v566_v48 = vpop.permute.xlu0 %565 }
 0x338   :  { %3289 = vmatmul.mubr.msk.f32.vlgmr.msra.gmra.mrb[2].mxu1 %vm246_vm9, %v566_v48 }
 0x339   :  { %3399 = vmatpush3.bf16.msra.mxu1 %v4242_v8  ;;  %3310 = vmatprep.mubr.msk.f32.mxu1 %vm4116_vm0, %v4117_v1 }
 0x33a   :  { %3400 = vmatprep.subr.bf16.mxu1 %v4115_v0 }
 0x33d   :  { %3402 = vmatpush3.bf16.msra.mxu1 %v4248_v12 }
 0x33e   :  { %3409 = vmatprep.subr.bf16.mxu1 %v4115_v0 }
 0x40b   :  { %v635_v53 = vpop.f32.mrb[2].mxu1 }
 0x40c   :  { %v3290_v11 = vpop.f32.mrb[3].mxu1  ;;  %v641_v13 = vrot.slane %v635_v53, 1  ;;  %v640_v14 = vrot.slane %v635_v53, 7  ;;  %v656_v17 = vadd.f32 %v635_v53, %v4276_v27  ;;  %v642_v18 = vrot.slane %v635_v53, 2 }
 0x40d   :  { %v643_v21 = vrot.slane %v635_v53, 3  ;;  %v644_v25 = vrot.slane %v635_v53, 4  ;;  %v645_v29 = vrot.slane %v635_v53, 5  ;;  %v646_v32 = vrot.slane %v635_v53, 6 }
 0x40e   :  { %v657_v19 = vadd.f32 %v641_v13, %v4281_v34  ;;  %v655_v23 = vadd.f32 %v640_v14, %v4274_v24  ;;  %3516 = vtanh.f32 %v656_v17  ;;  %v658_v26 = vadd.f32 %v642_v18, %v4278_v30 }
 0x40f   :  { %v659_v31 = vadd.f32 %v643_v21, %v4288_v41  ;;  %v660_v35 = vadd.f32 %v644_v25, %v4285_v39  ;;  %v661_v36 = vadd.f32 %v645_v29, %v4293_v46  ;;  %v662_v40 = vadd.f32 %v646_v32, %v4290_v43 }
 0x410   :  { %3518 = vtanh.f32 %v657_v19  ;;  %v3130_v55 = vmul.f32 -1.442695, %v656_v17  ;;  %v3131_v56 = vmul.f32 -1.442695, %v657_v19  ;;  %v3129_v28 = vmul.f32 -1.442695, %v655_v23 }
 0x411   :  { %3520 = vtanh.f32 %v655_v23  ;;  %v3132_v58 = vmul.f32 -1.442695, %v658_v26  ;;  %v3133_v59 = vmul.f32 -1.442695, %v659_v31  ;;  %v3134_v33 = vmul.f32 -1.442695, %v660_v35 }
 0x412   :  { %3522 = vtanh.f32 %v658_v26  ;;  %v3135_v20 = vmul.f32 -1.442695, %v661_v36  ;;  %v3136_v61 = vmul.f32 -1.442695, %v662_v40 }
 0x413   :  { %3524 = vtanh.f32 %v659_v31 }
 0x414   :  { %3526 = vtanh.f32 %v660_v35 }
 0x415   :  { %3528 = vtanh.f32 %v661_v36 }
 0x416   :  { %3530 = vtanh.f32 %v662_v40 }
 0x417   :  { %3532 = vpow2.f32 %v3130_v55 }
 0x418   :  { %v3517_v42 = vpop.eup %3516  ;;  %3534 = vpow2.f32 %v3131_v56 }
 0x419   :  { %761 = vrot.lane.b32.xlu1 %v3517_v42, %s4118_s3  ;;  %3536 = vpow2.f32 %v3129_v28 }
 0x41a   :  { %v3519_v44 = vpop.eup %3518  ;;  %3538 = vpow2.f32 %v3132_v58 }
 0x41b   :  { %763 = vrot.lane.b32.xlu0 %v3519_v44, %s4118_s3  ;;  %v3521_v45 = vpop.eup %3520  ;;  %3540 = vpow2.f32 %v3133_v59  ;;  %v728_v59 = vrot.slane %v4343_v60, 7 }
 0x41c   :  { %v3523_v49 = vpop.eup %3522  ;;  %3542 = vpow2.f32 %v3134_v33  ;;  %v729_v33 = vrot.slane %v4347_v63, 7 }
 0x41d   :  { %759 = vrot.lane.b32.xlu1 %v3521_v45, %s4118_s3  ;;  %v3525_v50 = vpop.eup %3524  ;;  %3544 = vpow2.f32 %v3135_v20 }
 0x41e   :  { %v3527_v51 = vpop.eup %3526  ;;  %3546 = vpow2.f32 %v3136_v61 }
 0x41f   :  { %765 = vrot.lane.b32.xlu0 %v3523_v49, %s4118_s3  ;;  %v3529_v52 = vpop.eup %3528 }
 0x420   :  { %v3531_v54 = vpop.eup %3530 }
 0x421   :  { %767 = vrot.lane.b32.xlu1 %v3525_v50, %s4118_s3  ;;  %v3533_v62 = vpop.eup %3532 }
 0x422   :  { %v3535_v2 = vpop.eup %3534  ;;  %v688_v37 = vadd.f32 1.0, %v3533_v62 }
 0x423   :  { %769 = vrot.lane.b32.xlu0 %v3527_v51, %s4118_s3  ;;  %v3537_v3 = vpop.eup %3536  ;;  %v689_v4 = vadd.f32 1.0, %v3535_v2  ;;  %v727_v2 = vrot.slane %v4339_v57, 7 }
 0x424   :  { %v3539_v38 = vpop.eup %3538  ;;  %3548 = vrcp.f32 %v688_v37  ;;  %v687_v5 = vadd.f32 1.0, %v3537_v3 }
 0x425   :  { %771 = vrot.lane.b32.xlu1 %v3529_v52, %s4118_s3  ;;  %v3541_v9 = vpop.eup %3540  ;;  %3550 = vrcp.f32 %v689_v4  ;;  %v690_v10 = vadd.f32 1.0, %v3539_v38  ;;  %v730_v4 = vrot.slane %v4352_v6, 7 }
 0x426   :  { %v3543_v47 = vpop.eup %3542  ;;  %3552 = vrcp.f32 %v687_v5  ;;  %v691_v48 = vadd.f32 1.0, %v3541_v9  ;;  %v731_v9 = vrot.slane %v4354_v7, 7 }
 0x427   :  { %773 = vrot.lane.b32.xlu0 %v3531_v54, %s4118_s3  ;;  %v3545_v53 = vpop.eup %3544  ;;  %3554 = vrcp.f32 %v690_v10  ;;  %v692_v11 = vadd.f32 1.0, %v3543_v47  ;;  %v732_v47 = vrot.slane %v4361_v15, 7 }
 0x428   :  { %v3547_v13 = vpop.eup %3546  ;;  %3556 = vrcp.f32 %v691_v48  ;;  %v693_v14 = vadd.f32 1.0, %v3545_v53 }
 0x429   :  { %3558 = vrcp.f32 %v692_v11  ;;  %v694_v17 = vadd.f32 1.0, %v3547_v13  ;;  %v733_v13 = vrot.slane %v4363_v16, 7 }
 0x42a   :  { %3560 = vrcp.f32 %v693_v14 }
 0x42b   :  { %3562 = vrcp.f32 %v694_v17  ;;  %v734_v17 = vrot.slane %v4369_v22, 7 }
 0x42e   :  { %v4417_v18 = vpop.eup %3548 }
 0x42f   :  { %v4419_v21 = vpop.eup %3550  ;;  %v744_v20 = vmul.f32 %v4417_v18, %v728_v59 }
 0x430   :  { %v4424_v29 = vpop.eup %3552  ;;  %v745_v62 = vmul.f32 %v4419_v21, %v729_v33 }
 0x431   :  { %v4427_v32 = vpop.eup %3554  ;;  %v743_v60 = vmul.f32 %v4424_v29, %v727_v2 }
 0x432   :  { %v4432_v42 = vpop.eup %3556  ;;  %v746_v5 = vmul.f32 %v4427_v32, %v730_v4 }
 0x433   :  { %v4435_v45 = vpop.eup %3558  ;;  %v747_v6 = vmul.f32 %v4432_v42, %v731_v9 }
 0x434   :  { %v4440_v52 = vpop.eup %3560  ;;  %v748_v11 = vmul.f32 %v4435_v45, %v732_v47 }
 0x435   :  { %v4443_v55 = vpop.eup %3562  ;;  %v749_v15 = vmul.f32 %v4440_v52, %v733_v13 }
 0x48b   :  { %v762_v19 = vpop.permute.xlu1 %761 }
 0x48c   :  { %v784_v23 = vmul.f32 %v4417_v18, %v762_v19 }
 0x48d   :  { %v764_v25 = vpop.permute.xlu0 %763 }
 0x48e   :  { %v785_v26 = vmul.f32 %v4419_v21, %v764_v25  ;;  %801 = vrot.lane.b32.xlu1 %v784_v23, %s4119_s29  ;;  %v750_v25 = vmul.f32 %v4443_v55, %v734_v17 }
 0x48f   :  { %v760_v31 = vpop.permute.xlu1 %759 }
 0x490   :  { %803 = vrot.lane.b32.xlu0 %v785_v26, %s4119_s29  ;;  %v783_v35 = vmul.f32 %v4424_v29, %v760_v31 }
 0x491   :  { %v766_v36 = vpop.permute.xlu0 %765 }
 0x492   :  { %v786_v40 = vmul.f32 %v4427_v32, %v766_v36  ;;  %799 = vrot.lane.b32.xlu1 %v783_v35, %s4119_s29 }
 0x493   :  { %v768_v44 = vpop.permute.xlu1 %767 }
 0x494   :  { %805 = vrot.lane.b32.xlu0 %v786_v40, %s4119_s29  ;;  %v787_v49 = vmul.f32 %v4432_v42, %v768_v44 }
 0x495   :  { %v770_v50 = vpop.permute.xlu0 %769 }
 0x496   :  { %v788_v51 = vmul.f32 %v4435_v45, %v770_v50  ;;  %807 = vrot.lane.b32.xlu1 %v787_v49, %s4119_s29 }
 0x497   :  { %v772_v54 = vpop.permute.xlu1 %771 }
 0x498   :  { %809 = vrot.lane.b32.xlu0 %v788_v51, %s4119_s29  ;;  %v789_v56 = vmul.f32 %v4440_v52, %v772_v54 }
 0x499   :  { %v774_v28 = vpop.permute.xlu0 %773 }
 0x49a   :  { %v790_v58 = vmul.f32 %v4443_v55, %v774_v28  ;;  %811 = vrot.lane.b32.xlu1 %v789_v56, %s4119_s29 }
 0x49c   :  { %813 = vrot.lane.b32.xlu0 %v790_v58, %s4119_s29 }
 0x500   :  { %v802_v61 = vpop.permute.xlu1 %801 }
 0x501   :  { %v4454_v37 = vadd.f32 %v802_v61, %v744_v20 }
 0x502   :  { %v804_v3 = vpop.permute.xlu0 %803 }
 0x503   :  { %v4457_v38 = vadd.f32 %v804_v3, %v745_v62  ;;  %3564 = vtanh.f32 %v4454_v37 }
 0x504   :  { %v800_v63 = vpop.permute.xlu1 %799 }
 0x505   :  { %3566 = vtanh.f32 %v4457_v38  ;;  %v4464_v10 = vadd.f32 %v800_v63, %v743_v60 }
 0x506   :  { %v806_v57 = vpop.permute.xlu0 %805 }
 0x507   :  { %v4467_v48 = vadd.f32 %v806_v57, %v746_v5  ;;  %3568 = vtanh.f32 %v4464_v10 }
 0x508   :  { %v808_v53 = vpop.permute.xlu1 %807 }
 0x509   :  { %3570 = vtanh.f32 %v4467_v48  ;;  %v4474_v14 = vadd.f32 %v808_v53, %v747_v6 }
 0x50a   :  { %v810_v7 = vpop.permute.xlu0 %809 }
 0x50b   :  { %v4477_v19 = vadd.f32 %v810_v7, %v748_v11  ;;  %3572 = vtanh.f32 %v4474_v14 }
 0x50c   :  { %v812_v23 = vpop.permute.xlu1 %811 }
 0x50d   :  { %3574 = vtanh.f32 %v4477_v19  ;;  %v3565_v26 = vpop.eup %3564  ;;  %v4483_v31 = vadd.f32 %v812_v23, %v749_v15 }
 0x50e   :  { %v814_v16 = vpop.permute.xlu0 %813  ;;  %849 = vrot.lane.b32.xlu1 %v3565_v26, %s4118_s3 }
 0x50f   :  { %v3567_v35 = vpop.eup %3566  ;;  %v4485_v36 = vadd.f32 %v814_v16, %v750_v25  ;;  %3576 = vtanh.f32 %v4483_v31 }
 0x510   :  { %851 = vrot.lane.b32.xlu0 %v3567_v35, %s4118_s3 }
 0x511   :  { %3578 = vtanh.f32 %v4485_v36  ;;  %v3569_v22 = vpop.eup %3568 }
 0x512   :  { %847 = vrot.lane.b32.xlu1 %v3569_v22, %s4118_s3 }
 0x513   :  { %v3571_v40 = vpop.eup %3570 }
 0x514   :  { %853 = vrot.lane.b32.xlu0 %v3571_v40, %s4118_s3 }
 0x515   :  { %v3573_v44 = vpop.eup %3572 }
 0x516   :  { %855 = vrot.lane.b32.xlu1 %v3573_v44, %s4118_s3 }
 0x517   :  { %v3575_v49 = vpop.eup %3574 }
 0x518   :  { %857 = vrot.lane.b32.xlu0 %v3575_v49, %s4118_s3 }
 0x519   :  { %v3577_v50 = vpop.eup %3576 }
 0x51a   :  { %859 = vrot.lane.b32.xlu1 %v3577_v50, %s4118_s3 }
 0x51b   :  { %v3579_v51 = vpop.eup %3578 }
 0x51c   :  { %861 = vrot.lane.b32.xlu0 %v3579_v51, %s4118_s3 }
 0x580   :  { %v850_v54 = vpop.permute.xlu1 %849 }
 0x581   :  { %v872_v61 = vmul.f32 %v4417_v18, %v850_v54 }
 0x582   :  { %v852_v56 = vpop.permute.xlu0 %851 }
 0x583   :  { %v873_v28 = vmul.f32 %v4419_v21, %v852_v56 }
 0x584   :  { %v848_v58 = vpop.permute.xlu1 %847 }
 0x585   :  { %v871_v59 = vmul.f32 %v4424_v29, %v848_v58  ;;  %v889_v2 = vrot.slane %v873_v28, 7 }
 0x586   :  { %v854_v33 = vpop.permute.xlu0 %853 }
 0x587   :  { %v874_v20 = vmul.f32 %v4427_v32, %v854_v33  ;;  %v887_v62 = vrot.slane %v871_v59, 1 }
 0x588   :  { %v856_v4 = vpop.permute.xlu1 %855 }
 0x589   :  { %v891_v3 = vrot.slane %v874_v20, 6  ;;  %v888_v60 = vsel %vm545_vm2, %v872_v61, %v887_v62  ;;  %v875_v63 = vmul.f32 %v4432_v42, %v856_v4 }
 0x58a   :  { %v858_v5 = vpop.permute.xlu0 %857  ;;  %v890_v9 = vsel %vm548_vm3, %v889_v2, %v888_v60 }
 0x58b   :  { %v876_v21 = vmul.f32 %v4435_v45, %v858_v5  ;;  %v892_v29 = vsel %vm551_vm4, %v891_v3, %v890_v9  ;;  %v893_v57 = vrot.slane %v875_v63, 5 }
 0x58c   :  { %v860_v32 = vpop.permute.xlu1 %859 }
 0x58d   :  { %v895_v47 = vrot.slane %v876_v21, 4  ;;  %v894_v18 = vsel %vm554_vm5, %v893_v57, %v892_v29  ;;  %v877_v6 = vmul.f32 %v4440_v52, %v860_v32 }
 0x58e   :  { %v862_v53 = vpop.permute.xlu0 %861 }
 0x58f   :  { %v878_v11 = vmul.f32 %v4443_v55, %v862_v53  ;;  %v896_v13 = vsel %vm557_vm6, %v895_v47, %v894_v18  ;;  %v897_v42 = vrot.slane %v877_v6, 3 }
 0x591   :  { %v899_v7 = vrot.slane %v878_v11, 2  ;;  %v898_v17 = vsel %vm560_vm7, %v897_v42, %v896_v13 }
 0x593   :  { %v900_v45 = vsel %vm563_vm8, %v899_v7, %v898_v17 }
 0x594   :  { %901 = vrot.lane.b32.xlu1 %v900_v45, %s4119_s29 }
 0x606   :  { %v902_v15 = vpop.permute.xlu1 %901 }
 0x607   :  { %3300 = vmatmul.mubr.msk.f32.vlgmr.msra.gmra.mrb[8].mxu0 %vm246_vm9, %v902_v15 }
 0x608   :  { %3405 = vmatpush3.bf16.msra.mxu0 %v4242_v8  ;;  %3321 = vmatprep.mubr.msk.f32.mxu0 %vm4116_vm0, %v4117_v1 }
 0x609   :  { %3406 = vmatprep.subr.bf16.mxu0 %v4115_v0 }
 0x60c   :  { %3408 = vmatpush3.bf16.msra.mxu0 %v4248_v12 }
 0x60d   :  { %3415 = vmatprep.subr.bf16.mxu0 %v4115_v0 }
 0x6da   :  { %v971_v52 = vpop.f32.mrb[8].mxu0 }
 0x6db   :  { %v976_v55 = vrot.slane %v971_v52, 6  ;;  %v3301_v23 = vpop.f32.mrb[9].mxu0  ;;  %v978_v26 = vrot.slane %v971_v52, 1  ;;  %v977_v16 = vrot.slane %v971_v52, 7  ;;  %v993_v35 = vadd.f32 %v971_v52, %v4281_v34 }
 0x6dc   :  { %v979_v22 = vrot.slane %v971_v52, 2  ;;  %v980_v49 = vrot.slane %v971_v52, 3  ;;  %v981_v51 = vrot.slane %v971_v52, 4  ;;  %v982_v56 = vrot.slane %v971_v52, 5 }
 0x6dd   :  { %v991_v25 = vadd.f32 %v976_v55, %v4274_v24  ;;  %v994_v40 = vadd.f32 %v978_v26, %v4278_v30  ;;  %v992_v50 = vadd.f32 %v977_v16, %v4276_v27  ;;  %v3140_v63 = vmul.f32 -1.442695, %v993_v35 }
 0x6de   :  { %v995_v54 = vadd.f32 %v979_v22, %v4288_v41  ;;  %v996_v28 = vadd.f32 %v980_v49, %v4285_v39  ;;  %v997_v58 = vadd.f32 %v981_v51, %v4293_v46  ;;  %v998_v59 = vadd.f32 %v982_v56, %v4290_v43 }
 0x6df   :  { %3580 = vtanh.f32 %v991_v25  ;;  %v3138_v60 = vmul.f32 -1.442695, %v991_v25  ;;  %v3141_v5 = vmul.f32 -1.442695, %v994_v40  ;;  %v3139_v21 = vmul.f32 -1.442695, %v992_v50 }
 0x6e0   :  { %3582 = vtanh.f32 %v993_v35  ;;  %v3142_v29 = vmul.f32 -1.442695, %v995_v54  ;;  %v3143_v47 = vmul.f32 -1.442695, %v996_v28  ;;  %v3144_v32 = vmul.f32 -1.442695, %v997_v58 }
 0x6e1   :  { %3584 = vtanh.f32 %v994_v40  ;;  %v3145_v18 = vmul.f32 -1.442695, %v998_v59 }
 0x6e2   :  { %3586 = vtanh.f32 %v992_v50 }
 0x6e3   :  { %3588 = vtanh.f32 %v995_v54 }
 0x6e4   :  { %3590 = vtanh.f32 %v996_v28 }
 0x6e5   :  { %3592 = vtanh.f32 %v997_v58 }
 0x6e6   :  { %3594 = vtanh.f32 %v998_v59 }
 0x6e7   :  { %3596 = vpow2.f32 %v3138_v60 }
 0x6e8   :  { %3598 = vpow2.f32 %v3140_v63 }
 0x6e9   :  { %v3581_v44 = vpop.eup %3580  ;;  %3600 = vpow2.f32 %v3141_v5 }
 0x6ea   :  { %1095 = vrot.lane.b32.xlu0 %v3581_v44, %s4118_s3  ;;  %v3583_v33 = vpop.eup %3582  ;;  %3602 = vpow2.f32 %v3139_v21  ;;  %v1063_v21 = vrot.slane %v4464_v10, 7 }
 0x6eb   :  { %v3585_v20 = vpop.eup %3584  ;;  %1099 = vrot.lane.b32.xlu1 %v3583_v33, %s4118_s3  ;;  %3604 = vpow2.f32 %v3142_v29 }
 0x6ec   :  { %v3587_v61 = vpop.eup %3586 }
 0x6ed   :  { %v3589_v62 = vpop.eup %3588 }
 0x6ee   :  { %1101 = vrot.lane.b32.xlu0 %v3585_v20, %s4118_s3  ;;  %v3591_v2 = vpop.eup %3590 }
 0x6ef   :  { %1097 = vrot.lane.b32.xlu1 %v3587_v61, %s4118_s3  ;;  %v3593_v3 = vpop.eup %3592 }
 0x6f0   :  { %v3595_v4 = vpop.eup %3594 }
 0x6f1   :  { %v3597_v9 = vpop.eup %3596 }
 0x6f2   :  { %1103 = vrot.lane.b32.xlu0 %v3589_v62, %s4118_s3  ;;  %v1023_v57 = vadd.f32 1.0, %v3597_v9  ;;  %v3599_v6 = vpop.eup %3598 }
 0x6f3   :  { %1105 = vrot.lane.b32.xlu1 %v3591_v2, %s4118_s3  ;;  %v3601_v53 = vpop.eup %3600  ;;  %v1025_v11 = vadd.f32 1.0, %v3599_v6 }
 0x6f4   :  { %3606 = vrcp.f32 %v1023_v57  ;;  %v3603_v13 = vpop.eup %3602  ;;  %v1026_v42 = vadd.f32 1.0, %v3601_v53 }
 0x6f5   :  { %3608 = vpow2.f32 %v3143_v47  ;;  %v3605_v7 = vpop.eup %3604  ;;  %v1024_v15 = vadd.f32 1.0, %v3603_v13  ;;  %v1064_v13 = vrot.slane %v4454_v37, 7  ;;  %v1068_v37 = vrot.slane %v4477_v19, 7 }
 0x6f6   :  { %1107 = vrot.lane.b32.xlu0 %v3593_v3, %s4118_s3  ;;  %3610 = vpow2.f32 %v3144_v32  ;;  %v1027_v23 = vadd.f32 1.0, %v3605_v7  ;;  %v1065_v32 = vrot.slane %v4457_v38, 7  ;;  %v1067_v7 = vrot.slane %v4474_v14, 7 }
 0x6f7   :  { %1109 = vrot.lane.b32.xlu1 %v3595_v4, %s4118_s3  ;;  %3612 = vpow2.f32 %v3145_v18  ;;  %v1066_v18 = vrot.slane %v4467_v48, 7  ;;  %v1069_v14 = vrot.slane %v4483_v31, 7 }
 0x6f8   :  { %3614 = vrcp.f32 %v1025_v11 }
 0x6f9   :  { %3616 = vrcp.f32 %v1026_v42 }
 0x6fa   :  { %3618 = vrcp.f32 %v1024_v15 }
 0x6fb   :  { %3620 = vrcp.f32 %v1027_v23 }
 0x6fe   :  { %v4536_v17 = vpop.eup %3606 }
 0x6ff   :  { %v3609_v52 = vpop.eup %3608  ;;  %v1079_v29 = vmul.f32 %v4536_v17, %v1063_v21 }
 0x700   :  { %v3611_v25 = vpop.eup %3610  ;;  %v1028_v26 = vadd.f32 1.0, %v3609_v52 }
 0x701   :  { %v3613_v16 = vpop.eup %3612  ;;  %v1029_v35 = vadd.f32 1.0, %v3611_v25 }
 0x702   :  { %3622 = vrcp.f32 %v1028_v26  ;;  %v1030_v22 = vadd.f32 1.0, %v3613_v16  ;;  %v4540_v40 = vpop.eup %3614 }
 0x703   :  { %3624 = vrcp.f32 %v1029_v35  ;;  %v4542_v49 = vpop.eup %3616  ;;  %v1081_v6 = vmul.f32 %v4540_v40, %v1065_v32 }
 0x704   :  { %3626 = vrcp.f32 %v1030_v22  ;;  %v4547_v56 = vpop.eup %3618  ;;  %v1082_v11 = vmul.f32 %v4542_v49, %v1066_v18  ;;  %v1070_v22 = vrot.slane %v4485_v36, 7 }
 0x705   :  { %v4550_v58 = vpop.eup %3620  ;;  %v1080_v38 = vmul.f32 %v4547_v56, %v1064_v13 }
 0x706   :  { %v1083_v52 = vmul.f32 %v4550_v58, %v1067_v7 }
 0x70c   :  { %v4555_v61 = vpop.eup %3622 }
 0x70d   :  { %v4558_v2 = vpop.eup %3624  ;;  %v1084_v26 = vmul.f32 %v4555_v61, %v1068_v37 }
 0x70e   :  { %v4563_v63 = vpop.eup %3626  ;;  %v1085_v35 = vmul.f32 %v4558_v2, %v1069_v14 }
 0x70f   :  { %v1086_v31 = vmul.f32 %v4563_v63, %v1070_v22 }
 0x75c   :  { %v1096_v45 = vpop.permute.xlu0 %1095 }
 0x75d   :  { %v1119_v55 = vmul.f32 %v4536_v17, %v1096_v45  ;;  %v1100_v44 = vpop.permute.xlu1 %1099 }
 0x75e   :  { %v1121_v50 = vmul.f32 %v4540_v40, %v1100_v44 }
 0x75f   :  { %1135 = vrot.lane.b32.xlu0 %v1119_v55, %s4119_s29 }
 0x760   :  { %v1102_v51 = vpop.permute.xlu0 %1101  ;;  %1139 = vrot.lane.b32.xlu1 %v1121_v50, %s4119_s29 }
 0x761   :  { %v1122_v54 = vmul.f32 %v4542_v49, %v1102_v51  ;;  %v1098_v28 = vpop.permute.xlu1 %1097 }
 0x762   :  { %v1120_v59 = vmul.f32 %v4547_v56, %v1098_v28 }
 0x763   :  { %1141 = vrot.lane.b32.xlu0 %v1122_v54, %s4119_s29 }
 0x764   :  { %v1104_v33 = vpop.permute.xlu0 %1103  ;;  %1137 = vrot.lane.b32.xlu1 %v1120_v59, %s4119_s29 }
 0x765   :  { %v1123_v20 = vmul.f32 %v4550_v58, %v1104_v33  ;;  %v1106_v62 = vpop.permute.xlu1 %1105 }
 0x766   :  { %v1124_v3 = vmul.f32 %v4555_v61, %v1106_v62 }
 0x767   :  { %1143 = vrot.lane.b32.xlu0 %v1123_v20, %s4119_s29 }
 0x768   :  { %v1108_v4 = vpop.permute.xlu0 %1107  ;;  %1145 = vrot.lane.b32.xlu1 %v1124_v3, %s4119_s29 }
 0x769   :  { %v1125_v60 = vmul.f32 %v4558_v2, %v1108_v4  ;;  %v1110_v5 = vpop.permute.xlu1 %1109 }
 0x76a   :  { %v1126_v9 = vmul.f32 %v4563_v63, %v1110_v5 }
 0x76b   :  { %1147 = vrot.lane.b32.xlu0 %v1125_v60, %s4119_s29 }
 0x76c   :  { %1149 = vrot.lane.b32.xlu1 %v1126_v9, %s4119_s29 }
 0x7d1   :  { %v1136_v57 = vpop.permute.xlu0 %1135 }
 0x7d2   :  { %v4570_v47 = vadd.f32 %v1136_v57, %v1079_v29  ;;  %v1140_v53 = vpop.permute.xlu1 %1139 }
 0x7d3   :  { %v4578_v42 = vadd.f32 %v1140_v53, %v1081_v6 }
 0x7d4   :  { %3628 = vtanh.f32 %v4570_v47 }
 0x7d5   :  { %v1142_v10 = vpop.permute.xlu0 %1141  ;;  %3630 = vtanh.f32 %v4578_v42 }
 0x7d6   :  { %v4581_v45 = vadd.f32 %v1142_v10, %v1082_v11  ;;  %v1138_v48 = vpop.permute.xlu1 %1137 }
 0x7d7   :  { %v4589_v55 = vadd.f32 %v1138_v48, %v1080_v38 }
 0x7d8   :  { %3632 = vtanh.f32 %v4581_v45 }
 0x7d9   :  { %v1144_v23 = vpop.permute.xlu0 %1143  ;;  %3634 = vtanh.f32 %v4589_v55 }
 0x7da   :  { %v4592_v25 = vadd.f32 %v1144_v23, %v1083_v52  ;;  %v1146_v16 = vpop.permute.xlu1 %1145 }
 0x7db   :  { %v4599_v44 = vadd.f32 %v1146_v16, %v1084_v26 }
 0x7dc   :  { %3636 = vtanh.f32 %v4592_v25 }
 0x7dd   :  { %v1148_v19 = vpop.permute.xlu0 %1147  ;;  %3638 = vtanh.f32 %v4599_v44 }
 0x7de   :  { %v3629_v15 = vpop.eup %3628  ;;  %v4601_v50 = vadd.f32 %v1148_v19, %v1085_v35  ;;  %v1150_v51 = vpop.permute.xlu1 %1149 }
 0x7df   :  { %1183 = vrot.lane.b32.xlu0 %v3629_v15, %s4118_s3  ;;  %v3631_v54 = vpop.eup %3630  ;;  %v4606_v28 = vadd.f32 %v1150_v51, %v1086_v31 }
 0x7e0   :  { %3640 = vtanh.f32 %v4601_v50  ;;  %1187 = vrot.lane.b32.xlu1 %v3631_v54, %s4118_s3 }
 0x7e1   :  { %3642 = vtanh.f32 %v4606_v28 }
 0x7e2   :  { %v3633_v59 = vpop.eup %3632 }
 0x7e3   :  { %1189 = vrot.lane.b32.xlu0 %v3633_v59, %s4118_s3  ;;  %v3635_v36 = vpop.eup %3634 }
 0x7e4   :  { %1185 = vrot.lane.b32.xlu1 %v3635_v36, %s4118_s3 }
 0x7e6   :  { %v3637_v33 = vpop.eup %3636 }
 0x7e7   :  { %1191 = vrot.lane.b32.xlu0 %v3637_v33, %s4118_s3  ;;  %v3639_v20 = vpop.eup %3638 }
 0x7e8   :  { %1193 = vrot.lane.b32.xlu1 %v3639_v20, %s4118_s3 }
 0x7ea   :  { %v3641_v62 = vpop.eup %3640 }
 0x7eb   :  { %1195 = vrot.lane.b32.xlu0 %v3641_v62, %s4118_s3  ;;  %v3643_v3 = vpop.eup %3642 }
 0x7ec   :  { %1197 = vrot.lane.b32.xlu1 %v3643_v3, %s4118_s3 }
 0x851   :  { %v1184_v4 = vpop.permute.xlu0 %1183 }
 0x852   :  { %v1188_v60 = vpop.permute.xlu1 %1187  ;;  %v1207_v9 = vmul.f32 %v4536_v17, %v1184_v4 }
 0x853   :  { %v1209_v13 = vmul.f32 %v4540_v40, %v1188_v60 }
 0x854   :  { %v1223_v6 = vrot.slane %v1207_v9, 2 }
 0x855   :  { %v1190_v5 = vpop.permute.xlu0 %1189 }
 0x856   :  { %v1210_v21 = vmul.f32 %v4542_v49, %v1190_v5  ;;  %v1186_v29 = vpop.permute.xlu1 %1185 }
 0x857   :  { %v1208_v57 = vmul.f32 %v4547_v56, %v1186_v29 }
 0x858   :  { %v1227_v11 = vrot.slane %v1210_v21, 7 }
 0x859   :  { %v1192_v32 = vpop.permute.xlu0 %1191  ;;  %v1224_v53 = vrot.slane %v1208_v57, 1 }
 0x85a   :  { %v1211_v18 = vmul.f32 %v4550_v58, %v1192_v32  ;;  %v1194_v10 = vpop.permute.xlu1 %1193 }
 0x85b   :  { %v1225_v15 = vsel %vm545_vm2, %v1224_v53, %v1223_v6  ;;  %v1212_v38 = vmul.f32 %v4555_v61, %v1194_v10 }
 0x85c   :  { %v1229_v7 = vrot.slane %v1211_v18, 6  ;;  %v1226_v49 = vsel %vm548_vm3, %v1209_v13, %v1225_v15 }
 0x85d   :  { %v1196_v17 = vpop.permute.xlu0 %1195  ;;  %v1228_v56 = vsel %vm551_vm4, %v1227_v11, %v1226_v49  ;;  %v1231_v52 = vrot.slane %v1212_v38, 5 }
 0x85e   :  { %v1213_v48 = vmul.f32 %v4558_v2, %v1196_v17  ;;  %v1230_v58 = vsel %vm554_vm5, %v1229_v7, %v1228_v56  ;;  %v1198_v37 = vpop.permute.xlu1 %1197 }
 0x85f   :  { %v1214_v40 = vmul.f32 %v4563_v63, %v1198_v37  ;;  %v1232_v14 = vsel %vm557_vm6, %v1231_v52, %v1230_v58 }
 0x860   :  { %v1233_v23 = vrot.slane %v1213_v48, 4 }
 0x861   :  { %v1235_v16 = vrot.slane %v1214_v40, 3 }
 0x862   :  { %v1234_v26 = vsel %vm560_vm7, %v1233_v23, %v1232_v14 }
 0x863   :  { %v1236_v61 = vsel %vm563_vm8, %v1235_v16, %v1234_v26 }
 0x864   :  { %1237 = vrot.lane.b32.xlu0 %v1236_v61, %s4119_s29 }
 0x8d6   :  { %v1238_v35 = vpop.permute.xlu0 %1237 }
 0x8d7   :  { %3311 = vmatmul.mubr.msk.f32.vlgmr.msra.gmra.mrb[4].mxu1 %vm246_vm9, %v1238_v35 }
 0x8d8   :  { %3411 = vmatpush3.bf16.msra.mxu1 %v4242_v8  ;;  %3332 = vmatprep.mubr.msk.f32.mxu1 %vm4116_vm0, %v4117_v1 }
 0x8d9   :  { %3412 = vmatprep.subr.bf16.mxu1 %v4115_v0 }
 0x8dc   :  { %3414 = vmatpush3.bf16.msra.mxu1 %v4248_v12 }
 0x8dd   :  { %3421 = vmatprep.subr.bf16.mxu1 %v4115_v0 }
 0x9aa   :  { %v1307_v2 = vpop.f32.mrb[4].mxu1 }
 0x9ab   :  { %v3312_v63 = vpop.f32.mrb[5].mxu1  ;;  %v1313_v22 = vrot.slane %v1307_v2, 6  ;;  %v1315_v19 = vrot.slane %v1307_v2, 1  ;;  %v1312_v51 = vrot.slane %v1307_v2, 5  ;;  %v1330_v54 = vadd.f32 %v1307_v2, %v4278_v30 }
 0x9ac   :  { %v1316_v59 = vrot.slane %v1307_v2, 2  ;;  %v1314_v33 = vrot.slane %v1307_v2, 7  ;;  %v1318_v62 = vrot.slane %v1307_v2, 4  ;;  %v1317_v4 = vrot.slane %v1307_v2, 3 }
 0x9ad   :  { %v1328_v31 = vadd.f32 %v1313_v22, %v4276_v27  ;;  %v1331_v36 = vadd.f32 %v1315_v19, %v4288_v41  ;;  %v1327_v20 = vadd.f32 %v1312_v51, %v4274_v24  ;;  %v3150_v10 = vmul.f32 -1.442695, %v1330_v54 }
 0x9ae   :  { %v1332_v3 = vadd.f32 %v1316_v59, %v4285_v39  ;;  %v1329_v60 = vadd.f32 %v1314_v33, %v4281_v34  ;;  %v1334_v5 = vadd.f32 %v1318_v62, %v4290_v43  ;;  %v1333_v21 = vadd.f32 %v1317_v4, %v4293_v46 }
 0x9af   :  { %3644 = vtanh.f32 %v1328_v31  ;;  %v3148_v13 = vmul.f32 -1.442695, %v1328_v31  ;;  %v3151_v7 = vmul.f32 -1.442695, %v1331_v36  ;;  %v3147_v15 = vmul.f32 -1.442695, %v1327_v20 }
 0x9b0   :  { %3646 = vtanh.f32 %v1330_v54  ;;  %v3152_v38 = vmul.f32 -1.442695, %v1332_v3  ;;  %v3149_v17 = vmul.f32 -1.442695, %v1329_v60  ;;  %v3154_v49 = vmul.f32 -1.442695, %v1334_v5 }
 0x9b1   :  { %3648 = vtanh.f32 %v1331_v36  ;;  %v3153_v56 = vmul.f32 -1.442695, %v1333_v21 }
 0x9b2   :  { %3650 = vtanh.f32 %v1327_v20 }
 0x9b3   :  { %3652 = vtanh.f32 %v1332_v3 }
 0x9b4   :  { %3654 = vtanh.f32 %v1329_v60 }
 0x9b5   :  { %3656 = vtanh.f32 %v1334_v5 }
 0x9b6   :  { %3658 = vtanh.f32 %v1333_v21 }
 0x9b7   :  { %3660 = vpow2.f32 %v3148_v13 }
 0x9b8   :  { %3662 = vpow2.f32 %v3150_v10 }
 0x9b9   :  { %v3645_v9 = vpop.eup %3644  ;;  %3664 = vpow2.f32 %v3151_v7 }
 0x9ba   :  { %1433 = vrot.lane.b32.xlu0 %v3645_v9, %s4118_s3  ;;  %v3647_v29 = vpop.eup %3646  ;;  %3666 = vpow2.f32 %v3147_v15 }
 0x9bb   :  { %1437 = vrot.lane.b32.xlu1 %v3647_v29, %s4118_s3  ;;  %v3649_v57 = vpop.eup %3648  ;;  %3668 = vpow2.f32 %v3152_v38  ;;  %v1400_v38 = vrot.slane %v4589_v55, 7 }
 0x9bc   :  { %v3651_v32 = vpop.eup %3650  ;;  %3670 = vpow2.f32 %v3149_v17  ;;  %v1402_v17 = vrot.slane %v4581_v45, 7  ;;  %v1404_v45 = vrot.slane %v4599_v44, 7 }
 0x9bd   :  { %v3653_v18 = vpop.eup %3652  ;;  %3672 = vpow2.f32 %v3154_v49 }
 0x9be   :  { %1439 = vrot.lane.b32.xlu0 %v3649_v57, %s4118_s3  ;;  %v3655_v6 = vpop.eup %3654  ;;  %3674 = vpow2.f32 %v3153_v56  ;;  %v1403_v56 = vrot.slane %v4592_v25, 7 }
 0x9bf   :  { %1431 = vrot.lane.b32.xlu1 %v3651_v32, %s4118_s3  ;;  %v3657_v53 = vpop.eup %3656 }
 0x9c0   :  { %v3659_v11 = vpop.eup %3658 }
 0x9c1   :  { %v3661_v48 = vpop.eup %3660 }
 0x9c2   :  { %1441 = vrot.lane.b32.xlu0 %v3653_v18, %s4118_s3  ;;  %v3663_v52 = vpop.eup %3662  ;;  %v1360_v58 = vadd.f32 1.0, %v3661_v48 }
 0x9c3   :  { %1435 = vrot.lane.b32.xlu1 %v3655_v6, %s4118_s3  ;;  %v3665_v37 = vpop.eup %3664  ;;  %v1362_v23 = vadd.f32 1.0, %v3663_v52 }
 0x9c4   :  { %v3667_v40 = vpop.eup %3666  ;;  %3676 = vrcp.f32 %v1360_v58  ;;  %v1363_v14 = vadd.f32 1.0, %v3665_v37 }
 0x9c5   :  { %v3669_v26 = vpop.eup %3668  ;;  %3678 = vrcp.f32 %v1362_v23  ;;  %v1359_v16 = vadd.f32 1.0, %v3667_v40  ;;  %v1399_v23 = vrot.slane %v4570_v47, 7 }
 0x9c6   :  { %1445 = vrot.lane.b32.xlu0 %v3657_v53, %s4118_s3  ;;  %v3671_v61 = vpop.eup %3670  ;;  %3680 = vrcp.f32 %v1363_v14  ;;  %v1364_v35 = vadd.f32 1.0, %v3669_v26 }
 0x9c7   :  { %1443 = vrot.lane.b32.xlu1 %v3659_v11, %s4118_s3  ;;  %v3673_v2 = vpop.eup %3672  ;;  %3682 = vrcp.f32 %v1359_v16  ;;  %v1361_v63 = vadd.f32 1.0, %v3671_v61  ;;  %v1401_v61 = vrot.slane %v4578_v42, 7 }
 0x9c8   :  { %v3675_v22 = vpop.eup %3674  ;;  %3684 = vrcp.f32 %v1364_v35  ;;  %v1366_v19 = vadd.f32 1.0, %v3673_v2 }
 0x9c9   :  { %3686 = vrcp.f32 %v1361_v63  ;;  %v1365_v54 = vadd.f32 1.0, %v3675_v22  ;;  %v1406_v63 = vrot.slane %v4606_v28, 7 }
 0x9ca   :  { %3688 = vrcp.f32 %v1366_v19 }
 0x9cb   :  { %3690 = vrcp.f32 %v1365_v54 }
 0x9ce   :  { %v4655_v31 = vpop.eup %3676 }
 0x9cf   :  { %v4658_v36 = vpop.eup %3678  ;;  %v1416_v49 = vmul.f32 %v4655_v31, %v1400_v38 }
 0x9d0   :  { %v4662_v62 = vpop.eup %3680  ;;  %v1418_v52 = vmul.f32 %v4658_v36, %v1402_v17 }
 0x9d1   :  { %v4666_v60 = vpop.eup %3682  ;;  %v1419_v55 = vmul.f32 %v4662_v62, %v1403_v56 }
 0x9d2   :  { %v4670_v21 = vpop.eup %3684  ;;  %v1415_v25 = vmul.f32 %v4666_v60, %v1399_v23 }
 0x9d3   :  { %v4674_v32 = vpop.eup %3686  ;;  %v1420_v47 = vmul.f32 %v4670_v21, %v1404_v45 }
 0x9d4   :  { %v4678_v53 = vpop.eup %3688  ;;  %v1417_v44 = vmul.f32 %v4674_v32, %v1401_v61 }
 0x9d5   :  { %v4682_v10 = vpop.eup %3690  ;;  %v1422_v42 = vmul.f32 %v4678_v53, %v1406_v63 }
 0xa2c   :  { %v1434_v51 = vpop.permute.xlu0 %1433 }
 0xa2d   :  { %v1456_v59 = vmul.f32 %v4655_v31, %v1434_v51  ;;  %v1438_v33 = vpop.permute.xlu1 %1437  ;;  %v1405_v51 = vrot.slane %v4601_v50, 7 }
 0xa2e   :  { %v1458_v20 = vmul.f32 %v4658_v36, %v1438_v33 }
 0xa2f   :  { %1473 = vrot.lane.b32.xlu0 %v1456_v59, %s4119_s29  ;;  %v1421_v28 = vmul.f32 %v4682_v10, %v1405_v51 }
 0xa30   :  { %v1440_v3 = vpop.permute.xlu0 %1439  ;;  %1477 = vrot.lane.b32.xlu1 %v1458_v20, %s4119_s29 }
 0xa31   :  { %v1459_v4 = vmul.f32 %v4662_v62, %v1440_v3  ;;  %v1432_v5 = vpop.permute.xlu1 %1431 }
 0xa32   :  { %v1455_v9 = vmul.f32 %v4666_v60, %v1432_v5 }
 0xa33   :  { %1479 = vrot.lane.b32.xlu0 %v1459_v4, %s4119_s29 }
 0xa34   :  { %v1442_v29 = vpop.permute.xlu0 %1441  ;;  %1471 = vrot.lane.b32.xlu1 %v1455_v9, %s4119_s29 }
 0xa35   :  { %v1460_v57 = vmul.f32 %v4670_v21, %v1442_v29  ;;  %v1436_v18 = vpop.permute.xlu1 %1435 }
 0xa36   :  { %v1457_v6 = vmul.f32 %v4674_v32, %v1436_v18 }
 0xa37   :  { %1481 = vrot.lane.b32.xlu0 %v1460_v57, %s4119_s29 }
 0xa38   :  { %v1446_v11 = vpop.permute.xlu0 %1445  ;;  %1475 = vrot.lane.b32.xlu1 %v1457_v6, %s4119_s29 }
 0xa39   :  { %v1462_v13 = vmul.f32 %v4678_v53, %v1446_v11  ;;  %v1444_v7 = vpop.permute.xlu1 %1443 }
 0xa3a   :  { %v1461_v15 = vmul.f32 %v4682_v10, %v1444_v7 }
 0xa3b   :  { %1485 = vrot.lane.b32.xlu0 %v1462_v13, %s4119_s29 }
 0xa3c   :  { %1483 = vrot.lane.b32.xlu1 %v1461_v15, %s4119_s29 }
 0xaa1   :  { %v1474_v48 = vpop.permute.xlu0 %1473 }
 0xaa2   :  { %v4692_v58 = vadd.f32 %v1474_v48, %v1416_v49  ;;  %v1478_v37 = vpop.permute.xlu1 %1477 }
 0xaa3   :  { %v4695_v40 = vadd.f32 %v1478_v37, %v1418_v52 }
 0xaa4   :  { %3692 = vtanh.f32 %v4692_v58 }
 0xaa5   :  { %v1480_v14 = vpop.permute.xlu0 %1479  ;;  %3694 = vtanh.f32 %v4695_v40 }
 0xaa6   :  { %v4702_v26 = vadd.f32 %v1480_v14, %v1419_v55  ;;  %v1472_v16 = vpop.permute.xlu1 %1471 }
 0xaa7   :  { %v4705_v35 = vadd.f32 %v1472_v16, %v1415_v25 }
 0xaa8   :  { %3696 = vtanh.f32 %v4702_v26 }
 0xaa9   :  { %v1482_v2 = vpop.permute.xlu0 %1481  ;;  %3698 = vtanh.f32 %v4705_v35 }
 0xaaa   :  { %v4712_v22 = vadd.f32 %v1482_v2, %v1420_v47  ;;  %v1476_v19 = vpop.permute.xlu1 %1475 }
 0xaab   :  { %v4715_v54 = vadd.f32 %v1476_v19, %v1417_v44 }
 0xaac   :  { %3700 = vtanh.f32 %v4712_v22 }
 0xaad   :  { %v1486_v59 = vpop.permute.xlu0 %1485  ;;  %3702 = vtanh.f32 %v4715_v54 }
 0xaae   :  { %v3693_v33 = vpop.eup %3692  ;;  %v4721_v20 = vadd.f32 %v1486_v59, %v1422_v42  ;;  %v1484_v3 = vpop.permute.xlu1 %1483 }
 0xaaf   :  { %1521 = vrot.lane.b32.xlu0 %v3693_v33, %s4118_s3  ;;  %v3695_v4 = vpop.eup %3694  ;;  %v4724_v5 = vadd.f32 %v1484_v3, %v1421_v28 }
 0xab0   :  { %3704 = vtanh.f32 %v4721_v20  ;;  %1525 = vrot.lane.b32.xlu1 %v3695_v4, %s4118_s3 }
 0xab1   :  { %3706 = vtanh.f32 %v4724_v5 }
 0xab2   :  { %v3697_v50 = vpop.eup %3696 }
 0xab3   :  { %1527 = vrot.lane.b32.xlu0 %v3697_v50, %s4118_s3  ;;  %v3699_v9 = vpop.eup %3698 }
 0xab4   :  { %1519 = vrot.lane.b32.xlu1 %v3699_v9, %s4118_s3 }
 0xab6   :  { %v3701_v29 = vpop.eup %3700 }
 0xab7   :  { %1529 = vrot.lane.b32.xlu0 %v3701_v29, %s4118_s3  ;;  %v3703_v57 = vpop.eup %3702 }
 0xab8   :  { %1523 = vrot.lane.b32.xlu1 %v3703_v57, %s4118_s3 }
 0xaba   :  { %v3705_v18 = vpop.eup %3704 }
 0xabb   :  { %1533 = vrot.lane.b32.xlu0 %v3705_v18, %s4118_s3  ;;  %v3707_v6 = vpop.eup %3706 }
 0xabc   :  { %1531 = vrot.lane.b32.xlu1 %v3707_v6, %s4118_s3 }
 0xb21   :  { %v1522_v11 = vpop.permute.xlu0 %1521 }
 0xb22   :  { %v1526_v13 = vpop.permute.xlu1 %1525  ;;  %v1544_v17 = vmul.f32 %v4655_v31, %v1522_v11 }
 0xb23   :  { %v1546_v16 = vmul.f32 %v4658_v36, %v1526_v13 }
 0xb24   :  { %v1560_v55 = vrot.slane %v1544_v17, 2 }
 0xb25   :  { %v1528_v7 = vpop.permute.xlu0 %1527 }
 0xb26   :  { %v1520_v15 = vpop.permute.xlu1 %1519  ;;  %v1547_v37 = vmul.f32 %v4662_v62, %v1528_v7 }
 0xb27   :  { %v1543_v38 = vmul.f32 %v4666_v60, %v1520_v15 }
 0xb28   :  { %v1565_v47 = vrot.slane %v1547_v37, 7 }
 0xb29   :  { %v1530_v49 = vpop.permute.xlu0 %1529  ;;  %v1559_v48 = vrot.slane %v1543_v38, 3 }
 0xb2a   :  { %v1524_v56 = vpop.permute.xlu1 %1523  ;;  %v1548_v52 = vmul.f32 %v4670_v21, %v1530_v49 }
 0xb2b   :  { %v1545_v23 = vmul.f32 %v4674_v32, %v1524_v56  ;;  %v1561_v60 = vsel %vm545_vm2, %v1560_v55, %v1559_v48 }
 0xb2c   :  { %v1567_v61 = vrot.slane %v1548_v52, 6 }
 0xb2d   :  { %v1534_v14 = vpop.permute.xlu0 %1533  ;;  %v1562_v45 = vrot.slane %v1545_v23, 1 }
 0xb2e   :  { %v1550_v25 = vmul.f32 %v4678_v53, %v1534_v14  ;;  %v1532_v31 = vpop.permute.xlu1 %1531 }
 0xb2f   :  { %v1563_v2 = vsel %vm548_vm3, %v1562_v45, %v1561_v60  ;;  %v1549_v21 = vmul.f32 %v4682_v10, %v1532_v31 }
 0xb30   :  { %v1564_v62 = vsel %vm551_vm4, %v1546_v16, %v1563_v2  ;;  %v1571_v63 = vrot.slane %v1550_v25, 4 }
 0xb31   :  { %v1566_v32 = vsel %vm554_vm5, %v1565_v47, %v1564_v62  ;;  %v1569_v44 = vrot.slane %v1549_v21, 5 }
 0xb32   :  { %v1568_v19 = vsel %vm557_vm6, %v1567_v61, %v1566_v32 }
 0xb33   :  { %v1570_v53 = vsel %vm560_vm7, %v1569_v44, %v1568_v19 }
 0xb34   :  { %v1572_v36 = vsel %vm563_vm8, %v1571_v63, %v1570_v53 }
 0xb35   :  { %1573 = vrot.lane.b32.xlu1 %v1572_v36, %s4119_s29 }
 0xba7   :  { %v1574_v51 = vpop.permute.xlu1 %1573 }
 0xba8   :  { %3322 = vmatmul.mubr.msk.f32.vlgmr.msra.gmra.mrb[10].mxu0 %vm246_vm9, %v1574_v51 }
 0xba9   :  { %3417 = vmatpush3.bf16.msra.mxu0 %v4242_v8  ;;  %3343 = vmatprep.mubr.msk.f32.mxu0 %vm4116_vm0, %v4117_v1 }
 0xbaa   :  { %3418 = vmatprep.subr.bf16.mxu0 %v4115_v0 }
 0xbad   :  { %3420 = vmatpush3.bf16.msra.mxu0 %v4248_v12 }
 0xbae   :  { %3427 = vmatprep.subr.bf16.mxu0 %v4115_v0 }
 0xc7b   :  { %v1643_v10 = vpop.f32.mrb[10].mxu0 }
 0xc7c   :  { %v1648_v42 = vrot.slane %v1643_v10, 4  ;;  %v3323_v59 = vpop.f32.mrb[11].mxu0  ;;  %v1650_v28 = vrot.slane %v1643_v10, 6  ;;  %v1652_v3 = vrot.slane %v1643_v10, 1  ;;  %v1649_v50 = vrot.slane %v1643_v10, 5 }
 0xc7d   :  { %v1667_v9 = vadd.f32 %v1643_v10, %v4288_v41  ;;  %v1653_v57 = vrot.slane %v1643_v10, 2  ;;  %v1651_v6 = vrot.slane %v1643_v10, 7  ;;  %v1654_v7 = vrot.slane %v1643_v10, 3 }
 0xc7e   :  { %v1663_v33 = vadd.f32 %v1648_v42, %v4274_v24  ;;  %v1665_v4 = vadd.f32 %v1650_v28, %v4281_v34  ;;  %v1668_v18 = vadd.f32 %v1652_v3, %v4285_v39  ;;  %v1664_v11 = vadd.f32 %v1649_v50, %v4276_v27 }
 0xc7f   :  { %v1669_v13 = vadd.f32 %v1653_v57, %v4293_v46  ;;  %v1666_v15 = vadd.f32 %v1651_v6, %v4278_v30  ;;  %v1670_v17 = vadd.f32 %v1654_v7, %v4290_v43  ;;  %v3160_v45 = vmul.f32 -1.442695, %v1667_v9 }
 0xc80   :  { %3708 = vtanh.f32 %v1663_v33  ;;  %v3156_v55 = vmul.f32 -1.442695, %v1663_v33  ;;  %v3158_v14 = vmul.f32 -1.442695, %v1665_v4  ;;  %v3161_v16 = vmul.f32 -1.442695, %v1668_v18 }
 0xc81   :  { %3710 = vtanh.f32 %v1665_v4  ;;  %v3157_v60 = vmul.f32 -1.442695, %v1664_v11  ;;  %v3162_v31 = vmul.f32 -1.442695, %v1669_v13  ;;  %v3159_v47 = vmul.f32 -1.442695, %v1666_v15 }
 0xc82   :  { %3712 = vtanh.f32 %v1667_v9  ;;  %v3163_v21 = vmul.f32 -1.442695, %v1670_v17 }
 0xc83   :  { %3714 = vtanh.f32 %v1668_v18 }
 0xc84   :  { %3716 = vtanh.f32 %v1664_v11 }
 0xc85   :  { %3718 = vtanh.f32 %v1669_v13 }
 0xc86   :  { %3720 = vtanh.f32 %v1666_v15 }
 0xc87   :  { %3722 = vtanh.f32 %v1670_v17 }
 0xc88   :  { %3724 = vpow2.f32 %v3156_v55 }
 0xc89   :  { %3726 = vpow2.f32 %v3158_v14 }
 0xc8a   :  { %v3709_v29 = vpop.eup %3708  ;;  %3728 = vpow2.f32 %v3160_v45 }
 0xc8b   :  { %1767 = vrot.lane.b32.xlu0 %v3709_v29, %s4118_s3  ;;  %v3711_v38 = vpop.eup %3710  ;;  %3730 = vpow2.f32 %v3161_v16  ;;  %v1735_v16 = vrot.slane %v4705_v35, 7 }
 0xc8c   :  { %v3713_v49 = vpop.eup %3712  ;;  %3732 = vpow2.f32 %v3157_v60 }
 0xc8d   :  { %1775 = vrot.lane.b32.xlu1 %v3713_v49, %s4118_s3  ;;  %v3715_v48 = vpop.eup %3714 }
 0xc8e   :  { %v3717_v56 = vpop.eup %3716 }
 0xc8f   :  { %1771 = vrot.lane.b32.xlu0 %v3711_v38, %s4118_s3  ;;  %v3719_v52 = vpop.eup %3718 }
 0xc90   :  { %v3721_v37 = vpop.eup %3720 }
 0xc91   :  { %1769 = vrot.lane.b32.xlu1 %v3717_v56, %s4118_s3  ;;  %v3723_v23 = vpop.eup %3722 }
 0xc92   :  { %v3725_v25 = vpop.eup %3724 }
 0xc93   :  { %1777 = vrot.lane.b32.xlu0 %v3715_v48, %s4118_s3  ;;  %v1695_v61 = vadd.f32 1.0, %v3725_v25  ;;  %v3727_v2 = vpop.eup %3726 }
 0xc94   :  { %v3729_v62 = vpop.eup %3728  ;;  %v1697_v63 = vadd.f32 1.0, %v3727_v2  ;;  %v1739_v2 = vrot.slane %v4702_v26, 7 }
 0xc95   :  { %1773 = vrot.lane.b32.xlu1 %v3721_v37, %s4118_s3  ;;  %3734 = vrcp.f32 %v1695_v61  ;;  %v3731_v32 = vpop.eup %3730  ;;  %v1699_v44 = vadd.f32 1.0, %v3729_v62 }
 0xc96   :  { %3736 = vpow2.f32 %v3162_v31  ;;  %v3733_v19 = vpop.eup %3732  ;;  %v1700_v51 = vadd.f32 1.0, %v3731_v32 }
 0xc97   :  { %1779 = vrot.lane.b32.xlu0 %v3719_v52, %s4118_s3  ;;  %3738 = vpow2.f32 %v3159_v47  ;;  %v1696_v59 = vadd.f32 1.0, %v3733_v19  ;;  %v1737_v47 = vrot.slane %v4715_v54, 7 }
 0xc98   :  { %3740 = vpow2.f32 %v3163_v21 }
 0xc99   :  { %1781 = vrot.lane.b32.xlu1 %v3723_v23, %s4118_s3  ;;  %3742 = vrcp.f32 %v1697_v63  ;;  %v1740_v63 = vrot.slane %v4712_v22, 7 }
 0xc9a   :  { %3744 = vrcp.f32 %v1699_v44 }
 0xc9b   :  { %3746 = vrcp.f32 %v1700_v51 }
 0xc9c   :  { %3748 = vrcp.f32 %v1696_v59 }
 0xc9f   :  { %v4774_v53 = vpop.eup %3734 }
 0xca0   :  { %v3737_v10 = vpop.eup %3736  ;;  %v1751_v60 = vmul.f32 %v4774_v53, %v1735_v16 }
 0xca1   :  { %v3739_v33 = vpop.eup %3738  ;;  %v1701_v28 = vadd.f32 1.0, %v3737_v10  ;;  %v1741_v10 = vrot.slane %v4724_v5, 7 }
 0xca2   :  { %v1698_v3 = vadd.f32 1.0, %v3739_v33  ;;  %v3741_v4 = vpop.eup %3740 }
 0xca3   :  { %3750 = vrcp.f32 %v1701_v28  ;;  %v4778_v50 = vpop.eup %3742  ;;  %v1702_v29 = vadd.f32 1.0, %v3741_v4 }
 0xca4   :  { %3752 = vrcp.f32 %v1698_v3  ;;  %v4781_v18 = vpop.eup %3744  ;;  %v1753_v21 = vmul.f32 %v4778_v50, %v1737_v47 }
 0xca5   :  { %v4785_v13 = vpop.eup %3746  ;;  %3754 = vrcp.f32 %v1702_v29  ;;  %v1755_v32 = vmul.f32 %v4781_v18, %v1739_v2  ;;  %v1742_v29 = vrot.slane %v4721_v20, 7 }
 0xca6   :  { %v4789_v38 = vpop.eup %3748  ;;  %v1756_v54 = vmul.f32 %v4785_v13, %v1740_v63 }
 0xcad   :  { %v4793_v48 = vpop.eup %3750 }
 0xcae   :  { %v4797_v37 = vpop.eup %3752  ;;  %v1757_v28 = vmul.f32 %v4793_v48, %v1741_v10 }
 0xcaf   :  { %v4802_v14 = vpop.eup %3754 }
 0xcfd   :  { %v1768_v36 = vpop.permute.xlu0 %1767 }
 0xcfe   :  { %v1791_v42 = vmul.f32 %v4774_v53, %v1768_v36  ;;  %v1736_v36 = vrot.slane %v4692_v58, 7  ;;  %v1738_v58 = vrot.slane %v4695_v40, 7 }
 0xcff   :  { %v1776_v6 = vpop.permute.xlu1 %1775 }
 0xd00   :  { %1807 = vrot.lane.b32.xlu0 %v1791_v42, %s4119_s29  ;;  %v1795_v11 = vmul.f32 %v4781_v18, %v1776_v6  ;;  %v1752_v22 = vmul.f32 %v4789_v38, %v1736_v36  ;;  %v1754_v5 = vmul.f32 %v4797_v37, %v1738_v58  ;;  %v1758_v6 = vmul.f32 %v4802_v14, %v1742_v29 }
 0xd01   :  { %v1772_v9 = vpop.permute.xlu0 %1771 }
 0xd02   :  { %v1793_v57 = vmul.f32 %v4778_v50, %v1772_v9  ;;  %1815 = vrot.lane.b32.xlu1 %v1795_v11, %s4119_s29 }
 0xd03   :  { %v1770_v17 = vpop.permute.xlu1 %1769 }
 0xd04   :  { %1811 = vrot.lane.b32.xlu0 %v1793_v57, %s4119_s29  ;;  %v1792_v49 = vmul.f32 %v4789_v38, %v1770_v17 }
 0xd05   :  { %v1778_v7 = vpop.permute.xlu0 %1777 }
 0xd06   :  { %v1796_v15 = vmul.f32 %v4785_v13, %v1778_v7  ;;  %1809 = vrot.lane.b32.xlu1 %v1792_v49, %s4119_s29 }
 0xd07   :  { %v1774_v23 = vpop.permute.xlu1 %1773 }
 0xd08   :  { %1817 = vrot.lane.b32.xlu0 %v1796_v15, %s4119_s29  ;;  %v1794_v55 = vmul.f32 %v4797_v37, %v1774_v23 }
 0xd09   :  { %v1780_v56 = vpop.permute.xlu0 %1779 }
 0xd0a   :  { %v1797_v52 = vmul.f32 %v4793_v48, %v1780_v56  ;;  %1813 = vrot.lane.b32.xlu1 %v1794_v55, %s4119_s29 }
 0xd0b   :  { %v1782_v45 = vpop.permute.xlu1 %1781 }
 0xd0c   :  { %1819 = vrot.lane.b32.xlu0 %v1797_v52, %s4119_s29  ;;  %v1798_v25 = vmul.f32 %v4802_v14, %v1782_v45 }
 0xd0e   :  { %1821 = vrot.lane.b32.xlu1 %v1798_v25, %s4119_s29 }
 0xd72   :  { %v1808_v61 = vpop.permute.xlu0 %1807 }
 0xd73   :  { %v4808_v31 = vadd.f32 %v1808_v61, %v1751_v60 }
 0xd74   :  { %v1816_v35 = vpop.permute.xlu1 %1815 }
 0xd75   :  { %3756 = vtanh.f32 %v4808_v31  ;;  %v4819_v51 = vadd.f32 %v1816_v35, %v1755_v32 }
 0xd76   :  { %v1812_v62 = vpop.permute.xlu0 %1811 }
 0xd77   :  { %v4816_v44 = vadd.f32 %v1812_v62, %v1753_v21 }
 0xd78   :  { %v1810_v59 = vpop.permute.xlu1 %1809 }
 0xd79   :  { %3758 = vtanh.f32 %v4816_v44  ;;  %v4830_v33 = vadd.f32 %v1810_v59, %v1752_v22 }
 0xd7a   :  { %v1818_v26 = vpop.permute.xlu0 %1817  ;;  %3760 = vtanh.f32 %v4819_v51 }
 0xd7b   :  { %v4827_v42 = vadd.f32 %v1818_v26, %v1756_v54 }
 0xd7c   :  { %v1814_v9 = vpop.permute.xlu1 %1813 }
 0xd7d   :  { %3762 = vtanh.f32 %v4827_v42  ;;  %v4839_v57 = vadd.f32 %v1814_v9, %v1754_v5 }
 0xd7e   :  { %v1820_v3 = vpop.permute.xlu0 %1819  ;;  %3764 = vtanh.f32 %v4830_v33 }
 0xd7f   :  { %v3757_v19 = vpop.eup %3756  ;;  %v4836_v4 = vadd.f32 %v1820_v3, %v1757_v28 }
 0xd80   :  { %1855 = vrot.lane.b32.xlu0 %v3757_v19, %s4118_s3  ;;  %v1822_v11 = vpop.permute.xlu1 %1821 }
 0xd81   :  { %3766 = vtanh.f32 %v4836_v4  ;;  %v4845_v15 = vadd.f32 %v1822_v11, %v1758_v6 }
 0xd82   :  { %3768 = vtanh.f32 %v4839_v57 }
 0xd83   :  { %v3759_v40 = vpop.eup %3758  ;;  %3770 = vtanh.f32 %v4845_v15 }
 0xd84   :  { %1859 = vrot.lane.b32.xlu0 %v3759_v40, %s4118_s3  ;;  %v3761_v7 = vpop.eup %3760 }
 0xd85   :  { %1863 = vrot.lane.b32.xlu1 %v3761_v7, %s4118_s3 }
 0xd87   :  { %v3763_v17 = vpop.eup %3762 }
 0xd88   :  { %1865 = vrot.lane.b32.xlu0 %v3763_v17, %s4118_s3  ;;  %v3765_v20 = vpop.eup %3764 }
 0xd89   :  { %1857 = vrot.lane.b32.xlu1 %v3765_v20, %s4118_s3 }
 0xd8b   :  { %v3767_v49 = vpop.eup %3766 }
 0xd8c   :  { %1867 = vrot.lane.b32.xlu0 %v3767_v49, %s4118_s3  ;;  %v3769_v56 = vpop.eup %3768 }
 0xd8d   :  { %1861 = vrot.lane.b32.xlu1 %v3769_v56, %s4118_s3  ;;  %v3771_v52 = vpop.eup %3770 }
 0xd91   :  { %1869 = vrot.lane.b32.xlu1 %v3771_v52, %s4118_s3 }
 0xdf2   :  { %v1856_v23 = vpop.permute.xlu0 %1855 }
 0xdf3   :  { %v1879_v60 = vmul.f32 %v4774_v53, %v1856_v23 }
 0xdf5   :  { %v1895_v62 = vrot.slane %v1879_v60, 4 }
 0xdf6   :  { %v1860_v55 = vpop.permute.xlu0 %1859 }
 0xdf7   :  { %v1864_v45 = vpop.permute.xlu1 %1863  ;;  %v1881_v25 = vmul.f32 %v4778_v50, %v1860_v55 }
 0xdf8   :  { %v1883_v10 = vmul.f32 %v4781_v18, %v1864_v45 }
 0xdf9   :  { %v1898_v2 = vrot.slane %v1881_v25, 2 }
 0xdfa   :  { %v1866_v16 = vpop.permute.xlu0 %1865 }
 0xdfb   :  { %v1858_v61 = vpop.permute.xlu1 %1857  ;;  %v1884_v32 = vmul.f32 %v4785_v13, %v1866_v16 }
 0xdfc   :  { %v1880_v47 = vmul.f32 %v4789_v38, %v1858_v61 }
 0xdfd   :  { %v1903_v53 = vrot.slane %v1884_v32, 7 }
 0xdfe   :  { %v1868_v21 = vpop.permute.xlu0 %1867  ;;  %v1896_v63 = vrot.slane %v1880_v47, 3 }
 0xdff   :  { %v1862_v35 = vpop.permute.xlu1 %1861  ;;  %v1885_v19 = vmul.f32 %v4793_v48, %v1868_v21 }
 0xe00   :  { %v1897_v36 = vsel %vm545_vm2, %v1896_v63, %v1895_v62  ;;  %v1882_v54 = vmul.f32 %v4797_v37, %v1862_v35 }
 0xe01   :  { %v1899_v50 = vsel %vm548_vm3, %v1898_v2, %v1897_v36  ;;  %v1905_v22 = vrot.slane %v1885_v19, 6 }
 0xe02   :  { %v1900_v26 = vrot.slane %v1882_v54, 1 }
 0xe03   :  { %v1870_v38 = vpop.permute.xlu1 %1869 }
 0xe04   :  { %v1901_v59 = vsel %vm551_vm4, %v1900_v26, %v1899_v50  ;;  %v1886_v58 = vmul.f32 %v4802_v14, %v1870_v38 }
 0xe05   :  { %v1902_v13 = vsel %vm554_vm5, %v1883_v10, %v1901_v59 }
 0xe06   :  { %v1904_v48 = vsel %vm557_vm6, %v1903_v53, %v1902_v13  ;;  %v1907_v28 = vrot.slane %v1886_v58, 5 }
 0xe07   :  { %v1906_v3 = vsel %vm560_vm7, %v1905_v22, %v1904_v48 }
 0xe08   :  { %v1908_v37 = vsel %vm563_vm8, %v1907_v28, %v1906_v3 }
 0xe09   :  { %1909 = vrot.lane.b32.xlu0 %v1908_v37, %s4119_s29 }
 0xe7b   :  { %v1910_v5 = vpop.permute.xlu0 %1909 }
 0xe7c   :  { %3333 = vmatmul.mubr.msk.f32.vlgmr.msra.gmra.mrb[6].mxu1 %vm246_vm9, %v1910_v5 }
 0xe7d   :  { %3423 = vmatpush3.bf16.msra.mxu1 %v4242_v8  ;;  %3354 = vmatprep.mubr.msk.f32.mxu1 %vm4116_vm0, %v4117_v1 }
 0xe7e   :  { %3424 = vmatprep.subr.bf16.mxu1 %v4115_v0 }
 0xe81   :  { %3426 = vmatpush3.bf16.msra.mxu1 %v4248_v12 }
 0xe82   :  { %3433 = vmatprep.subr.bf16.mxu1 %v4115_v0 }
 0xf4f   :  { %v1979_v18 = vpop.f32.mrb[6].mxu1 }
 0xf50   :  { %v1984_v14 = vrot.slane %v1979_v18, 3  ;;  %v3334_v9 = vpop.f32.mrb[7].mxu1  ;;  %v1985_v40 = vrot.slane %v1979_v18, 4  ;;  %v1986_v6 = vrot.slane %v1979_v18, 5  ;;  %v1987_v11 = vrot.slane %v1979_v18, 6 }
 0xf51   :  { %v1988_v7 = vrot.slane %v1979_v18, 7  ;;  %v1989_v20 = vrot.slane %v1979_v18, 1  ;;  %v1990_v52 = vrot.slane %v1979_v18, 2  ;;  %v2004_v55 = vadd.f32 %v1979_v18, %v4285_v39 }
 0xf52   :  { %v1999_v29 = vadd.f32 %v1984_v14, %v4274_v24  ;;  %v2000_v8 = vadd.f32 %v1985_v40, %v4276_v27  ;;  %v2001_v17 = vadd.f32 %v1986_v6, %v4281_v34  ;;  %v2002_v49 = vadd.f32 %v1987_v11, %v4278_v30 }
 0xf53   :  { %v2003_v56 = vadd.f32 %v1988_v7, %v4288_v41  ;;  %v2005_v23 = vadd.f32 %v1989_v20, %v4293_v46  ;;  %v2006_v45 = vadd.f32 %v1990_v52, %v4290_v43  ;;  %v3170_v26 = vmul.f32 -1.442695, %v2004_v55 }
 0xf54   :  { %3772 = vtanh.f32 %v1999_v29  ;;  %v3165_v62 = vmul.f32 -1.442695, %v1999_v29  ;;  %v3166_v63 = vmul.f32 -1.442695, %v2000_v8  ;;  %v3167_v32 = vmul.f32 -1.442695, %v2001_v17 }
 0xf55   :  { %3774 = vtanh.f32 %v2000_v8  ;;  %v3168_v35 = vmul.f32 -1.442695, %v2002_v49  ;;  %v3169_v36 = vmul.f32 -1.442695, %v2003_v56  ;;  %v3171_v54 = vmul.f32 -1.442695, %v2005_v23 }
 0xf56   :  { %3776 = vtanh.f32 %v2001_v17  ;;  %v3172_v53 = vmul.f32 -1.442695, %v2006_v45 }
 0xf57   :  { %3778 = vtanh.f32 %v2002_v49 }
 0xf58   :  { %3780 = vtanh.f32 %v2003_v56 }
 0xf59   :  { %3782 = vtanh.f32 %v2005_v23 }
 0xf5a   :  { %3784 = vtanh.f32 %v2004_v55 }
 0xf5b   :  { %3786 = vtanh.f32 %v2006_v45 }
 0xf5c   :  { %3788 = vpow2.f32 %v3165_v62 }
 0xf5d   :  { %3790 = vpow2.f32 %v3166_v63 }
 0xf5e   :  { %v3773_v12 = vpop.eup %3772  ;;  %3792 = vpow2.f32 %v3167_v32  ;;  %v2071_v32 = vrot.slane %v4808_v31, 7 }
 0xf5f   :  { %2103 = vrot.lane.b32.xlu1 %v3773_v12, %s4118_s3  ;;  %v3775_v25 = vpop.eup %3774  ;;  %3794 = vpow2.f32 %v3168_v35 }
 0xf60   :  { %v3777_v16 = vpop.eup %3776  ;;  %2105 = vrot.lane.b32.xlu0 %v3775_v25, %s4118_s3  ;;  %3796 = vpow2.f32 %v3169_v36 }
 0xf61   :  { %v3779_v60 = vpop.eup %3778  ;;  %3798 = vpow2.f32 %v3171_v54  ;;  %v2072_v54 = vrot.slane %v4830_v33, 7 }
 0xf62   :  { %v3781_v61 = vpop.eup %3780 }
 0xf63   :  { %2107 = vrot.lane.b32.xlu1 %v3777_v16, %s4118_s3  ;;  %v3783_v47 = vpop.eup %3782 }
 0xf64   :  { %2109 = vrot.lane.b32.xlu0 %v3779_v60, %s4118_s3  ;;  %v3785_v2 = vpop.eup %3784 }
 0xf65   :  { %v3787_v21 = vpop.eup %3786 }
 0xf66   :  { %v3789_v19 = vpop.eup %3788 }
 0xf67   :  { %2111 = vrot.lane.b32.xlu1 %v3781_v61, %s4118_s3  ;;  %v2031_v50 = vadd.f32 1.0, %v3789_v19  ;;  %v3791_v10 = vpop.eup %3790 }
 0xf68   :  { %2115 = vrot.lane.b32.xlu0 %v3783_v47, %s4118_s3  ;;  %v3793_v38 = vpop.eup %3792  ;;  %v2032_v22 = vadd.f32 1.0, %v3791_v10 }
 0xf69   :  { %3800 = vrcp.f32 %v2031_v50  ;;  %v3795_v59 = vpop.eup %3794  ;;  %v2033_v58 = vadd.f32 1.0, %v3793_v38  ;;  %v2073_v50 = vrot.slane %v4816_v44, 7  ;;  %v2074_v38 = vrot.slane %v4839_v57, 7 }
 0xf6a   :  { %3802 = vpow2.f32 %v3170_v26  ;;  %v3797_v13 = vpop.eup %3796  ;;  %v2034_v28 = vadd.f32 1.0, %v3795_v59  ;;  %v2075_v59 = vrot.slane %v4819_v51, 7  ;;  %v2076_v51 = vrot.slane %v4827_v42, 7 }
 0xf6b   :  { %2113 = vrot.lane.b32.xlu1 %v3785_v2, %s4118_s3  ;;  %3804 = vpow2.f32 %v3172_v53  ;;  %v3799_v48 = vpop.eup %3798  ;;  %v2035_v5 = vadd.f32 1.0, %v3797_v13 }
 0xf6c   :  { %2117 = vrot.lane.b32.xlu0 %v3787_v21, %s4118_s3  ;;  %3806 = vrcp.f32 %v2032_v22  ;;  %v2037_v9 = vadd.f32 1.0, %v3799_v48 }
 0xf6d   :  { %3808 = vrcp.f32 %v2033_v58 }
 0xf6e   :  { %3810 = vrcp.f32 %v2034_v28  ;;  %v2077_v28 = vrot.slane %v4836_v4, 7  ;;  %v2078_v4 = vrot.slane %v4845_v15, 7 }
 0xf6f   :  { %3812 = vrcp.f32 %v2035_v5 }
 0xf70   :  { %3814 = vrcp.f32 %v2037_v9 }
 0xf73   :  { %v4893_v3 = vpop.eup %3800 }
 0xf74   :  { %v3803_v18 = vpop.eup %3802  ;;  %v2087_v35 = vmul.f32 %v4893_v3, %v2071_v32 }
 0xf75   :  { %v3805_v29 = vpop.eup %3804  ;;  %v2036_v40 = vadd.f32 1.0, %v3803_v18 }
 0xf76   :  { %v2038_v6 = vadd.f32 1.0, %v3805_v29  ;;  %v4897_v11 = vpop.eup %3806 }
 0xf77   :  { %3816 = vrcp.f32 %v2036_v40  ;;  %v4899_v7 = vpop.eup %3808  ;;  %v2088_v26 = vmul.f32 %v4897_v11, %v2072_v54 }
 0xf78   :  { %3818 = vrcp.f32 %v2038_v6  ;;  %v4904_v12 = vpop.eup %3810  ;;  %v2089_v10 = vmul.f32 %v4899_v7, %v2073_v50 }
 0xf79   :  { %v4907_v52 = vpop.eup %3812  ;;  %v2090_v33 = vmul.f32 %v4904_v12, %v2074_v38 }
 0xf7a   :  { %v4912_v25 = vpop.eup %3814  ;;  %v2091_v48 = vmul.f32 %v4907_v52, %v2075_v59 }
 0xf7b   :  { %v2093_v18 = vmul.f32 %v4912_v25, %v2077_v28 }
 0xf81   :  { %v4915_v60 = vpop.eup %3816 }
 0xf82   :  { %v4920_v21 = vpop.eup %3818  ;;  %v2092_v9 = vmul.f32 %v4915_v60, %v2076_v51 }
 0xf83   :  { %v2094_v42 = vmul.f32 %v4920_v21, %v2078_v4 }
 0xfd1   :  { %v2104_v37 = vpop.permute.xlu1 %2103 }
 0xfd2   :  { %v2127_v14 = vmul.f32 %v4893_v3, %v2104_v37  ;;  %v2106_v8 = vpop.permute.xlu0 %2105 }
 0xfd3   :  { %v2128_v17 = vmul.f32 %v4897_v11, %v2106_v8 }
 0xfd4   :  { %2143 = vrot.lane.b32.xlu1 %v2127_v14, %s4119_s29 }
 0xfd5   :  { %v2108_v20 = vpop.permute.xlu1 %2107  ;;  %2145 = vrot.lane.b32.xlu0 %v2128_v17, %s4119_s29 }
 0xfd6   :  { %v2129_v49 = vmul.f32 %v4899_v7, %v2108_v20  ;;  %v2110_v56 = vpop.permute.xlu0 %2109 }
 0xfd7   :  { %v2130_v23 = vmul.f32 %v4904_v12, %v2110_v56 }
 0xfd8   :  { %2147 = vrot.lane.b32.xlu1 %v2129_v49, %s4119_s29 }
 0xfd9   :  { %v2112_v55 = vpop.permute.xlu1 %2111  ;;  %2149 = vrot.lane.b32.xlu0 %v2130_v23, %s4119_s29 }
 0xfda   :  { %v2131_v45 = vmul.f32 %v4907_v52, %v2112_v55  ;;  %v2116_v16 = vpop.permute.xlu0 %2115 }
 0xfdb   :  { %v2133_v61 = vmul.f32 %v4912_v25, %v2116_v16 }
 0xfdc   :  { %2151 = vrot.lane.b32.xlu1 %v2131_v45, %s4119_s29 }
 0xfdd   :  { %v2114_v47 = vpop.permute.xlu1 %2113  ;;  %2155 = vrot.lane.b32.xlu0 %v2133_v61, %s4119_s29 }
 0xfde   :  { %v2132_v2 = vmul.f32 %v4915_v60, %v2114_v47  ;;  %v2118_v62 = vpop.permute.xlu0 %2117 }
 0xfdf   :  { %v2134_v63 = vmul.f32 %v4920_v21, %v2118_v62 }
 0xfe0   :  { %2153 = vrot.lane.b32.xlu1 %v2132_v2, %s4119_s29 }
 0xfe1   :  { %2157 = vrot.lane.b32.xlu0 %v2134_v63, %s4119_s29 }
0x1046   :  { %v2144_v19 = vpop.permute.xlu1 %2143 }
0x1047   :  { %v4927_v36 = vadd.f32 %v2144_v19, %v2087_v35  ;;  %v2146_v53 = vpop.permute.xlu0 %2145 }
0x1048   :  { %v4935_v22 = vadd.f32 %v2146_v53, %v2088_v26 }
0x1049   :  { %3820 = vtanh.f32 %v4927_v36 }
0x104a   :  { %v2148_v31 = vpop.permute.xlu1 %2147  ;;  %3822 = vtanh.f32 %v4935_v22 }
0x104b   :  { %v4938_v58 = vadd.f32 %v2148_v31, %v2089_v10  ;;  %v2150_v44 = vpop.permute.xlu0 %2149 }
0x104c   :  { %v4945_v57 = vadd.f32 %v2150_v44, %v2090_v33 }
0x104d   :  { %3824 = vtanh.f32 %v4938_v58 }
0x104e   :  { %v2152_v37 = vpop.permute.xlu1 %2151  ;;  %3826 = vtanh.f32 %v4945_v57 }
0x104f   :  { %v4949_v5 = vadd.f32 %v2152_v37, %v2091_v48  ;;  %v2156_v14 = vpop.permute.xlu0 %2155 }
0x1050   :  { %v4956_v29 = vadd.f32 %v2156_v14, %v2093_v18 }
0x1051   :  { %3828 = vtanh.f32 %v4949_v5 }
0x1052   :  { %v2154_v40 = vpop.permute.xlu1 %2153  ;;  %3830 = vtanh.f32 %v4956_v29 }
0x1053   :  { %v3821_v13 = vpop.eup %3820  ;;  %v4958_v6 = vadd.f32 %v2154_v40, %v2092_v9  ;;  %v2158_v8 = vpop.permute.xlu0 %2157 }
0x1054   :  { %2191 = vrot.lane.b32.xlu1 %v3821_v13, %s4118_s3  ;;  %v3823_v17 = vpop.eup %3822  ;;  %v4963_v20 = vadd.f32 %v2158_v8, %v2094_v42 }
0x1055   :  { %3832 = vtanh.f32 %v4958_v6  ;;  %2193 = vrot.lane.b32.xlu0 %v3823_v17, %s4118_s3 }
0x1056   :  { %3834 = vtanh.f32 %v4963_v20 }
0x1057   :  { %v3825_v49 = vpop.eup %3824 }
0x1058   :  { %2195 = vrot.lane.b32.xlu1 %v3825_v49, %s4118_s3  ;;  %v3827_v15 = vpop.eup %3826 }
0x1059   :  { %2197 = vrot.lane.b32.xlu0 %v3827_v15, %s4118_s3 }
0x105b   :  { %v3829_v56 = vpop.eup %3828 }
0x105c   :  { %2199 = vrot.lane.b32.xlu1 %v3829_v56, %s4118_s3  ;;  %v3831_v23 = vpop.eup %3830 }
0x105d   :  { %2203 = vrot.lane.b32.xlu0 %v3831_v23, %s4118_s3 }
0x105f   :  { %v3833_v55 = vpop.eup %3832 }
0x1060   :  { %2201 = vrot.lane.b32.xlu1 %v3833_v55, %s4118_s3  ;;  %v3835_v45 = vpop.eup %3834 }
0x1061   :  { %2205 = vrot.lane.b32.xlu0 %v3835_v45, %s4118_s3 }
0x10c6   :  { %v2192_v16 = vpop.permute.xlu1 %2191 }
0x10c7   :  { %v2215_v61 = vmul.f32 %v4893_v3, %v2192_v16  ;;  %v2194_v47 = vpop.permute.xlu0 %2193 }
0x10c8   :  { %v2216_v2 = vmul.f32 %v4897_v11, %v2194_v47 }
0x10c9   :  { %v2231_v62 = vrot.slane %v2215_v61, 5 }
0x10ca   :  { %v2196_v63 = vpop.permute.xlu1 %2195  ;;  %v2232_v35 = vrot.slane %v2216_v2, 4 }
0x10cb   :  { %v2217_v32 = vmul.f32 %v4899_v7, %v2196_v63  ;;  %v2198_v19 = vpop.permute.xlu0 %2197 }
0x10cc   :  { %v2233_v50 = vsel %vm545_vm2, %v2232_v35, %v2231_v62  ;;  %v2218_v26 = vmul.f32 %v4904_v12, %v2198_v19 }
0x10cd   :  { %v2234_v54 = vrot.slane %v2217_v32, 3 }
0x10ce   :  { %v2200_v53 = vpop.permute.xlu1 %2199  ;;  %v2236_v3 = vrot.slane %v2218_v26, 2 }
0x10cf   :  { %v2235_v10 = vsel %vm548_vm3, %v2234_v54, %v2233_v50  ;;  %v2219_v38 = vmul.f32 %v4907_v52, %v2200_v53  ;;  %v2204_v31 = vpop.permute.xlu0 %2203 }
0x10d0   :  { %v2221_v11 = vmul.f32 %v4912_v25, %v2204_v31  ;;  %v2237_v33 = vsel %vm551_vm4, %v2236_v3, %v2235_v10 }
0x10d1   :  { %v2238_v59 = vrot.slane %v2219_v38, 1 }
0x10d2   :  { %v2202_v7 = vpop.permute.xlu1 %2201  ;;  %v2241_v48 = vrot.slane %v2221_v11, 7 }
0x10d3   :  { %v2239_v13 = vsel %vm554_vm5, %v2238_v59, %v2237_v33  ;;  %v2220_v44 = vmul.f32 %v4915_v60, %v2202_v7  ;;  %v2206_v28 = vpop.permute.xlu0 %2205 }
0x10d4   :  { %v2222_v37 = vmul.f32 %v4920_v21, %v2206_v28 }
0x10d5   :  { %v2240_v12 = vsel %vm557_vm6, %v2220_v44, %v2239_v13 }
0x10d6   :  { %v2242_v52 = vsel %vm560_vm7, %v2241_v48, %v2240_v12  ;;  %v2243_v51 = vrot.slane %v2222_v37, 6 }
0x10d8   :  { %v2244_v18 = vsel %vm563_vm8, %v2243_v51, %v2242_v52 }
0x10d9   :  { %2245 = vrot.lane.b32.xlu1 %v2244_v18, %s4119_s29 }
0x114b   :  { %v2246_v25 = vpop.permute.xlu1 %2245 }
0x114c   :  { %3344 = vmatmul.mubr.msk.f32.vlgmr.msra.gmra.mrb[12].mxu0 %vm246_vm9, %v2246_v25 }
0x114d   :  { %3365 = vmatprep.mubr.msk.f32.mxu0 %vm4116_vm0, %v4117_v1 }
0x121f   :  { %v2315_v60 = vpop.f32.mrb[12].mxu0 }
0x1220   :  { %v2320_v14 = vrot.slane %v2315_v60, 2  ;;  %v3345_v9 = vpop.f32.mrb[13].mxu0  ;;  %v2321_v21 = vrot.slane %v2315_v60, 3  ;;  %v2322_v40 = vrot.slane %v2315_v60, 4  ;;  %v2323_v42 = vrot.slane %v2315_v60, 5 }
0x1221   :  { %v2324_v17 = vrot.slane %v2315_v60, 6  ;;  %v2325_v15 = vrot.slane %v2315_v60, 7  ;;  %v2326_v55 = vrot.slane %v2315_v60, 1  ;;  %v2341_v47 = vadd.f32 %v2315_v60, %v4293_v46 }
0x1222   :  { %v2335_v4 = vadd.f32 %v2320_v14, %v4274_v24  ;;  %v2336_v8 = vadd.f32 %v2321_v21, %v4276_v27  ;;  %v2337_v49 = vadd.f32 %v2322_v40, %v4281_v34  ;;  %v2338_v56 = vadd.f32 %v2323_v42, %v4278_v30 }
0x1223   :  { %v2339_v45 = vadd.f32 %v2324_v17, %v4288_v41  ;;  %v2340_v16 = vadd.f32 %v2325_v15, %v4285_v39  ;;  %v2342_v61 = vadd.f32 %v2326_v55, %v4290_v43  ;;  %v3180_v33 = vmul.f32 -1.442695, %v2341_v47 }
0x1224   :  { %3836 = vtanh.f32 %v2335_v4  ;;  %v3174_v50 = vmul.f32 -1.442695, %v2335_v4  ;;  %v3175_v26 = vmul.f32 -1.442695, %v2336_v8  ;;  %v3176_v53 = vmul.f32 -1.442695, %v2337_v49 }
0x1225   :  { %3838 = vtanh.f32 %v2336_v8  ;;  %v3177_v10 = vmul.f32 -1.442695, %v2338_v56  ;;  %v3178_v3 = vmul.f32 -1.442695, %v2339_v45  ;;  %v3179_v31 = vmul.f32 -1.442695, %v2340_v16 }
0x1226   :  { %3840 = vtanh.f32 %v2337_v49  ;;  %v3181_v11 = vmul.f32 -1.442695, %v2342_v61 }
0x1227   :  { %3842 = vtanh.f32 %v2338_v56 }
0x1228   :  { %3844 = vtanh.f32 %v2339_v45 }
0x1229   :  { %3846 = vtanh.f32 %v2340_v16 }
0x122a   :  { %3848 = vtanh.f32 %v2342_v61 }
0x122b   :  { %3850 = vtanh.f32 %v2341_v47 }
0x122c   :  { %3852 = vpow2.f32 %v3174_v50 }
0x122d   :  { %3854 = vpow2.f32 %v3175_v26 }
0x122e   :  { %v3837_v23 = vpop.eup %3836  ;;  %3856 = vpow2.f32 %v3176_v53  ;;  %v2407_v53 = vrot.slane %v4927_v36, 7 }
0x122f   :  { %2439 = vrot.lane.b32.xlu0 %v3837_v23, %s4118_s3  ;;  %v3839_v2 = vpop.eup %3838  ;;  %3858 = vpow2.f32 %v3177_v10 }
0x1230   :  { %v3841_v62 = vpop.eup %3840  ;;  %2441 = vrot.lane.b32.xlu1 %v3839_v2, %s4118_s3  ;;  %3860 = vpow2.f32 %v3178_v3 }
0x1231   :  { %v3843_v63 = vpop.eup %3842  ;;  %3862 = vpow2.f32 %v3179_v31  ;;  %v2408_v31 = vrot.slane %v4935_v22, 7 }
0x1232   :  { %v3845_v32 = vpop.eup %3844 }
0x1233   :  { %2443 = vrot.lane.b32.xlu0 %v3841_v62, %s4118_s3  ;;  %v3847_v35 = vpop.eup %3846 }
0x1234   :  { %2445 = vrot.lane.b32.xlu1 %v3843_v63, %s4118_s3  ;;  %v3849_v19 = vpop.eup %3848 }
0x1235   :  { %v3851_v54 = vpop.eup %3850 }
0x1236   :  { %v3853_v38 = vpop.eup %3852 }
0x1237   :  { %2447 = vrot.lane.b32.xlu0 %v3845_v32, %s4118_s3  ;;  %v2367_v59 = vadd.f32 1.0, %v3853_v38  ;;  %v3855_v7 = vpop.eup %3854 }
0x1238   :  { %2449 = vrot.lane.b32.xlu1 %v3847_v35, %s4118_s3  ;;  %v3857_v13 = vpop.eup %3856  ;;  %v2368_v44 = vadd.f32 1.0, %v3855_v7 }
0x1239   :  { %3864 = vrcp.f32 %v2367_v59  ;;  %v3859_v48 = vpop.eup %3858  ;;  %v2369_v28 = vadd.f32 1.0, %v3857_v13  ;;  %v2409_v59 = vrot.slane %v4938_v58, 7  ;;  %v2410_v13 = vrot.slane %v4945_v57, 7 }
0x123a   :  { %3866 = vpow2.f32 %v3181_v11  ;;  %v3861_v12 = vpop.eup %3860  ;;  %v2370_v52 = vadd.f32 1.0, %v3859_v48  ;;  %v2411_v48 = vrot.slane %v4949_v5, 7  ;;  %v2414_v5 = vrot.slane %v4963_v20, 7 }
0x123b   :  { %2453 = vrot.lane.b32.xlu0 %v3849_v19, %s4118_s3  ;;  %3868 = vpow2.f32 %v3180_v33  ;;  %v3863_v37 = vpop.eup %3862  ;;  %v2371_v25 = vadd.f32 1.0, %v3861_v12 }
0x123c   :  { %2451 = vrot.lane.b32.xlu1 %v3851_v54, %s4118_s3  ;;  %3870 = vrcp.f32 %v2368_v44  ;;  %v2372_v9 = vadd.f32 1.0, %v3863_v37 }
0x123d   :  { %3872 = vrcp.f32 %v2369_v28 }
0x123e   :  { %3874 = vrcp.f32 %v2370_v52  ;;  %v2412_v52 = vrot.slane %v4958_v6, 7  ;;  %v2413_v6 = vrot.slane %v4956_v29, 7 }
0x123f   :  { %3876 = vrcp.f32 %v2371_v25 }
0x1240   :  { %3878 = vrcp.f32 %v2372_v9 }
0x1243   :  { %v5008_v51 = vpop.eup %3864 }
0x1244   :  { %v3867_v60 = vpop.eup %3866  ;;  %v2423_v10 = vmul.f32 %v5008_v51, %v2407_v53 }
0x1245   :  { %v3869_v4 = vpop.eup %3868  ;;  %v2374_v21 = vadd.f32 1.0, %v3867_v60 }
0x1246   :  { %v2373_v40 = vadd.f32 1.0, %v3869_v4  ;;  %v5012_v42 = vpop.eup %3870 }
0x1247   :  { %3880 = vrcp.f32 %v2374_v21  ;;  %v5014_v17 = vpop.eup %3872  ;;  %v2424_v11 = vmul.f32 %v5012_v42, %v2408_v31 }
0x1248   :  { %3882 = vrcp.f32 %v2373_v40  ;;  %v5019_v23 = vpop.eup %3874  ;;  %v2425_v7 = vmul.f32 %v5014_v17, %v2409_v59 }
0x1249   :  { %v5022_v45 = vpop.eup %3876  ;;  %v2426_v22 = vmul.f32 %v5019_v23, %v2410_v13 }
0x124a   :  { %v5027_v2 = vpop.eup %3878  ;;  %v2427_v37 = vmul.f32 %v5022_v45, %v2411_v48 }
0x124b   :  { %v2428_v60 = vmul.f32 %v5027_v2, %v2412_v52 }
0x1251   :  { %v5030_v63 = vpop.eup %3880 }
0x1252   :  { %v5035_v54 = vpop.eup %3882  ;;  %v2430_v9 = vmul.f32 %v5030_v63, %v2414_v5 }
0x1253   :  { %v2429_v20 = vmul.f32 %v5035_v54, %v2413_v6 }
0x12a1   :  { %v2440_v18 = vpop.permute.xlu0 %2439 }
0x12a2   :  { %v2463_v14 = vmul.f32 %v5008_v51, %v2440_v18  ;;  %v2442_v8 = vpop.permute.xlu1 %2441 }
0x12a3   :  { %v2464_v49 = vmul.f32 %v5012_v42, %v2442_v8 }
0x12a4   :  { %2479 = vrot.lane.b32.xlu0 %v2463_v14, %s4119_s29 }
0x12a5   :  { %v2444_v15 = vpop.permute.xlu0 %2443  ;;  %2481 = vrot.lane.b32.xlu1 %v2464_v49, %s4119_s29 }
0x12a6   :  { %v2465_v56 = vmul.f32 %v5014_v17, %v2444_v15  ;;  %v2446_v55 = vpop.permute.xlu1 %2445 }
0x12a7   :  { %v2466_v16 = vmul.f32 %v5019_v23, %v2446_v55 }
0x12a8   :  { %2483 = vrot.lane.b32.xlu0 %v2465_v56, %s4119_s29 }
0x12a9   :  { %v2448_v61 = vpop.permute.xlu0 %2447  ;;  %2485 = vrot.lane.b32.xlu1 %v2466_v16, %s4119_s29 }
0x12aa   :  { %v2467_v47 = vmul.f32 %v5022_v45, %v2448_v61  ;;  %v2450_v62 = vpop.permute.xlu1 %2449 }
0x12ab   :  { %v2468_v32 = vmul.f32 %v5027_v2, %v2450_v62 }
0x12ac   :  { %2487 = vrot.lane.b32.xlu0 %v2467_v47, %s4119_s29 }
0x12ad   :  { %v2454_v35 = vpop.permute.xlu0 %2453  ;;  %2489 = vrot.lane.b32.xlu1 %v2468_v32, %s4119_s29 }
0x12ae   :  { %v2470_v19 = vmul.f32 %v5030_v63, %v2454_v35  ;;  %v2452_v50 = vpop.permute.xlu1 %2451 }
0x12af   :  { %v2469_v26 = vmul.f32 %v5035_v54, %v2452_v50 }
0x12b0   :  { %2493 = vrot.lane.b32.xlu0 %v2470_v19, %s4119_s29 }
0x12b1   :  { %2491 = vrot.lane.b32.xlu1 %v2469_v26, %s4119_s29 }
0x1316   :  { %v2480_v38 = vpop.permute.xlu0 %2479 }
0x1317   :  { %v5042_v3 = vadd.f32 %v2480_v38, %v2423_v10  ;;  %v2482_v33 = vpop.permute.xlu1 %2481 }
0x1318   :  { %v5050_v44 = vadd.f32 %v2482_v33, %v2424_v11 }
0x1319   :  { %3884 = vtanh.f32 %v5042_v3 }
0x131a   :  { %v2484_v36 = vpop.permute.xlu0 %2483  ;;  %3886 = vtanh.f32 %v5050_v44 }
0x131b   :  { %v5053_v28 = vadd.f32 %v2484_v36, %v2425_v7  ;;  %v2486_v58 = vpop.permute.xlu1 %2485 }
0x131c   :  { %v5060_v57 = vadd.f32 %v2486_v58, %v2426_v22 }
0x131d   :  { %3888 = vtanh.f32 %v5053_v28 }
0x131e   :  { %v2488_v18 = vpop.permute.xlu0 %2487  ;;  %3890 = vtanh.f32 %v5060_v57 }
0x131f   :  { %v5064_v25 = vadd.f32 %v2488_v18, %v2427_v37  ;;  %v2490_v14 = vpop.permute.xlu1 %2489 }
0x1320   :  { %v5071_v4 = vadd.f32 %v2490_v14, %v2428_v60 }
0x1321   :  { %3892 = vtanh.f32 %v5064_v25 }
0x1322   :  { %v2494_v21 = vpop.permute.xlu0 %2493  ;;  %3894 = vtanh.f32 %v5071_v4 }
0x1323   :  { %v3885_v12 = vpop.eup %3884  ;;  %v5073_v40 = vadd.f32 %v2494_v21, %v2430_v9  ;;  %v2492_v8 = vpop.permute.xlu1 %2491 }
0x1324   :  { %2527 = vrot.lane.b32.xlu0 %v3885_v12, %s4118_s3  ;;  %v3887_v49 = vpop.eup %3886  ;;  %v5078_v15 = vadd.f32 %v2492_v8, %v2429_v20 }
0x1325   :  { %3896 = vtanh.f32 %v5073_v40  ;;  %2529 = vrot.lane.b32.xlu1 %v3887_v49, %s4118_s3 }
0x1326   :  { %3898 = vtanh.f32 %v5078_v15 }
0x1327   :  { %v3889_v56 = vpop.eup %3888 }
0x1328   :  { %2531 = vrot.lane.b32.xlu0 %v3889_v56, %s4118_s3  ;;  %v3891_v29 = vpop.eup %3890 }
0x1329   :  { %2533 = vrot.lane.b32.xlu1 %v3891_v29, %s4118_s3 }
0x132b   :  { %v3893_v55 = vpop.eup %3892 }
0x132c   :  { %2535 = vrot.lane.b32.xlu0 %v3893_v55, %s4118_s3  ;;  %v3895_v16 = vpop.eup %3894 }
0x132d   :  { %2537 = vrot.lane.b32.xlu1 %v3895_v16, %s4118_s3 }
0x132f   :  { %v3897_v61 = vpop.eup %3896 }
0x1330   :  { %2541 = vrot.lane.b32.xlu0 %v3897_v61, %s4118_s3  ;;  %v3899_v47 = vpop.eup %3898 }
0x1331   :  { %2539 = vrot.lane.b32.xlu1 %v3899_v47, %s4118_s3 }
0x1396   :  { %v2528_v62 = vpop.permute.xlu0 %2527 }
0x1397   :  { %v2551_v32 = vmul.f32 %v5008_v51, %v2528_v62  ;;  %v2530_v35 = vpop.permute.xlu1 %2529 }
0x1398   :  { %v2552_v19 = vmul.f32 %v5012_v42, %v2530_v35 }
0x1399   :  { %v2567_v50 = vrot.slane %v2551_v32, 6 }
0x139a   :  { %v2532_v26 = vpop.permute.xlu0 %2531  ;;  %v2568_v10 = vrot.slane %v2552_v19, 5 }
0x139b   :  { %v2553_v53 = vmul.f32 %v5014_v17, %v2532_v26  ;;  %v2534_v38 = vpop.permute.xlu1 %2533 }
0x139c   :  { %v2569_v59 = vsel %vm545_vm2, %v2568_v10, %v2567_v50  ;;  %v2554_v11 = vmul.f32 %v5019_v23, %v2534_v38 }
0x139d   :  { %v2570_v31 = vrot.slane %v2553_v53, 4 }
0x139e   :  { %v2536_v33 = vpop.permute.xlu0 %2535  ;;  %v2572_v51 = vrot.slane %v2554_v11, 3 }
0x139f   :  { %v2571_v7 = vsel %vm548_vm3, %v2570_v31, %v2569_v59  ;;  %v2555_v13 = vmul.f32 %v5022_v45, %v2536_v33  ;;  %v2538_v36 = vpop.permute.xlu1 %2537 }
0x13a0   :  { %v2556_v42 = vmul.f32 %v5027_v2, %v2538_v36  ;;  %v2573_v22 = vsel %vm551_vm4, %v2572_v51, %v2571_v7 }
0x13a1   :  { %v2574_v48 = vrot.slane %v2555_v13, 2 }
0x13a2   :  { %v2542_v17 = vpop.permute.xlu0 %2541  ;;  %v2576_v37 = vrot.slane %v2556_v42, 1 }
0x13a3   :  { %v2575_v12 = vsel %vm554_vm5, %v2574_v48, %v2573_v22  ;;  %v2558_v58 = vmul.f32 %v5030_v63, %v2542_v17  ;;  %v2540_v52 = vpop.permute.xlu1 %2539 }
0x13a4   :  { %v2557_v18 = vmul.f32 %v5035_v54, %v2540_v52  ;;  %v2577_v5 = vsel %vm557_vm6, %v2576_v37, %v2575_v12 }
0x13a5   :  { %v2579_v23 = vrot.slane %v2558_v58, 7 }
0x13a6   :  { %v2578_v45 = vsel %vm560_vm7, %v2557_v18, %v2577_v5 }
0x13a7   :  { %v2580_v60 = vsel %vm563_vm8, %v2579_v23, %v2578_v45 }
0x13a8   :  { %2581 = vrot.lane.b32.xlu0 %v2580_v60, %s4119_s29 }
0x141a   :  { %v2582_v2 = vpop.permute.xlu0 %2581 }
0x141b   :  { %3355 = vmatmul.mubr.msk.f32.vlgmr.msra.gmra.mrb[8].mxu1 %vm246_vm9, %v2582_v2 }
0x141c   :  { %3376 = vmatprep.mubr.msk.f32.mxu1 %vm4116_vm0, %v4117_v1 }
0x14ee   :  { %v2651_v63 = vpop.f32.mrb[8].mxu1 }
0x14ef   :  { %v2656_v14 = vrot.slane %v2651_v63, 1  ;;  %v3356_v9 = vpop.f32.mrb[9].mxu1  ;;  %v2657_v54 = vrot.slane %v2651_v63, 2  ;;  %v2658_v21 = vrot.slane %v2651_v63, 3  ;;  %v2659_v20 = vrot.slane %v2651_v63, 4 }
0x14f0   :  { %v2660_v49 = vrot.slane %v2651_v63, 5  ;;  %v2661_v29 = vrot.slane %v2651_v63, 6  ;;  %v2662_v1 = vrot.slane %v2651_v63, 7 }
0x14f1   :  { %v2671_v6 = vadd.f32 %v2656_v14, %v4274_v24  ;;  %v2672_v8 = vadd.f32 %v2657_v54, %v4276_v27  ;;  %v2673_v56 = vadd.f32 %v2658_v21, %v4281_v34  ;;  %v2674_v55 = vadd.f32 %v2659_v20, %v4278_v30 }
0x14f2   :  { %v2675_v61 = vadd.f32 %v2660_v49, %v4288_v41  ;;  %v2676_v24 = vadd.f32 %v2661_v29, %v4285_v39  ;;  %v2677_v47 = vadd.f32 %v2662_v1, %v4293_v46  ;;  %v2678_v27 = vadd.f32 %v2651_v63, %v4290_v43 }
0x14f3   :  { %3900 = vtanh.f32 %v2671_v6  ;;  %v3183_v32 = vmul.f32 -1.442695, %v2671_v6  ;;  %v3184_v35 = vmul.f32 -1.442695, %v2672_v8  ;;  %v3185_v19 = vmul.f32 -1.442695, %v2673_v56 }
0x14f4   :  { %3902 = vtanh.f32 %v2672_v8  ;;  %v3186_v50 = vmul.f32 -1.442695, %v2674_v55  ;;  %v3187_v53 = vmul.f32 -1.442695, %v2675_v61  ;;  %v3188_v10 = vmul.f32 -1.442695, %v2676_v24 }
0x14f5   :  { %3904 = vtanh.f32 %v2673_v56  ;;  %v3189_v31 = vmul.f32 -1.442695, %v2677_v47  ;;  %v3190_v59 = vmul.f32 -1.442695, %v2678_v27 }
0x14f6   :  { %3906 = vtanh.f32 %v2674_v55 }
0x14f7   :  { %3908 = vtanh.f32 %v2675_v61 }
0x14f8   :  { %3910 = vtanh.f32 %v2676_v24 }
0x14f9   :  { %3912 = vtanh.f32 %v2677_v47 }
0x14fa   :  { %3914 = vtanh.f32 %v2678_v27 }
0x14fb   :  { %3916 = vpow2.f32 %v3183_v32 }
0x14fc   :  { %3918 = vpow2.f32 %v3184_v35 }
0x14fd   :  { %v3901_v16 = vpop.eup %3900  ;;  %3920 = vpow2.f32 %v3185_v19  ;;  %v2746_v19 = vrot.slane %v5060_v57, 7  ;;  %v2749_v57 = vrot.slane %v5078_v15, 7 }
0x14fe   :  { %2775 = vrot.lane.b32.xlu1 %v3901_v16, %s4118_s3  ;;  %v3903_v34 = vpop.eup %3902  ;;  %3922 = vpow2.f32 %v3186_v50 }
0x14ff   :  { %v3905_v30 = vpop.eup %3904  ;;  %2777 = vrot.lane.b32.xlu0 %v3903_v34, %s4118_s3  ;;  %3924 = vpow2.f32 %v3187_v53  ;;  %v2743_v34 = vrot.slane %v5042_v3, 7  ;;  %v2747_v3 = vrot.slane %v5064_v25, 7 }
0x1500   :  { %v3907_v41 = vpop.eup %3906  ;;  %3926 = vpow2.f32 %v3188_v10 }
0x1501   :  { %v3909_v62 = vpop.eup %3908 }
0x1502   :  { %2779 = vrot.lane.b32.xlu1 %v3905_v30, %s4118_s3  ;;  %v3911_v39 = vpop.eup %3910 }
0x1503   :  { %2781 = vrot.lane.b32.xlu0 %v3907_v41, %s4118_s3  ;;  %v3913_v46 = vpop.eup %3912 }
0x1504   :  { %v3915_v43 = vpop.eup %3914 }
0x1505   :  { %v3917_v26 = vpop.eup %3916 }
0x1506   :  { %2783 = vrot.lane.b32.xlu1 %v3909_v62, %s4118_s3  ;;  %v2703_v38 = vadd.f32 1.0, %v3917_v26  ;;  %v3919_v11 = vpop.eup %3918 }
0x1507   :  { %2785 = vrot.lane.b32.xlu0 %v3911_v39, %s4118_s3  ;;  %v3921_v33 = vpop.eup %3920  ;;  %v2704_v7 = vadd.f32 1.0, %v3919_v11  ;;  %v2744_v39 = vrot.slane %v5050_v44, 7 }
0x1508   :  { %3928 = vrcp.f32 %v2703_v38  ;;  %v3923_v13 = vpop.eup %3922  ;;  %v2705_v51 = vadd.f32 1.0, %v3921_v33 }
0x1509   :  { %3930 = vpow2.f32 %v3189_v31  ;;  %v3925_v36 = vpop.eup %3924  ;;  %v2706_v42 = vadd.f32 1.0, %v3923_v13 }
0x150a   :  { %2787 = vrot.lane.b32.xlu1 %v3913_v46, %s4118_s3  ;;  %3932 = vpow2.f32 %v3190_v59  ;;  %v3927_v48 = vpop.eup %3926  ;;  %v2707_v12 = vadd.f32 1.0, %v3925_v36  ;;  %v2745_v46 = vrot.slane %v5053_v28, 7  ;;  %v2748_v28 = vrot.slane %v5071_v4, 7 }
0x150b   :  { %2789 = vrot.lane.b32.xlu0 %v3915_v43, %s4118_s3  ;;  %3934 = vrcp.f32 %v2704_v7  ;;  %v2708_v52 = vadd.f32 1.0, %v3927_v48 }
0x150c   :  { %3936 = vrcp.f32 %v2705_v51  ;;  %v2750_v51 = vrot.slane %v5073_v40, 7 }
0x150d   :  { %3938 = vrcp.f32 %v2706_v42 }
0x150e   :  { %3940 = vrcp.f32 %v2707_v12 }
0x150f   :  { %3942 = vrcp.f32 %v2708_v52  ;;  %v2896_v52 = vld [vmem:[#allocation8 + $0x8] sm:$0xff] }
0x1512   :  { %v5123_v22 = vpop.eup %3928 }
0x1513   :  { %v3931_v58 = vpop.eup %3930  ;;  %v2759_v30 = vmul.f32 %v5123_v22, %v2743_v34  ;;  %v3004_v34 = vld [vmem:[#allocation10 + $0x8] sm:$0xff] }
0x1514   :  { %v3933_v23 = vpop.eup %3932  ;;  %v2709_v18 = vadd.f32 1.0, %v3931_v58 }
0x1515   :  { %v2710_v5 = vadd.f32 1.0, %v3933_v23  ;;  %v5127_v45 = vpop.eup %3934  ;;  %v2897_v23 = vld [vmem:[#allocation8 + $0x10] sm:$0xff] }
0x1516   :  { %3944 = vrcp.f32 %v2709_v18  ;;  %v5129_v2 = vpop.eup %3936  ;;  %v2760_v43 = vmul.f32 %v5127_v45, %v2744_v39 }
0x1517   :  { %3946 = vrcp.f32 %v2710_v5  ;;  %v5134_v6 = vpop.eup %3938  ;;  %v2761_v35 = vmul.f32 %v5129_v2, %v2745_v46  ;;  %v2898_v5 = vld [vmem:[#allocation8 + $0x18] sm:$0xff] }
0x1518   :  { %v5137_v21 = vpop.eup %3940  ;;  %v2762_v10 = vmul.f32 %v5134_v6, %v2746_v19 }
0x1519   :  { %v5142_v56 = vpop.eup %3942  ;;  %v2763_v44 = vmul.f32 %v5137_v21, %v2747_v3 }
0x151a   :  { %v2764_v25 = vmul.f32 %v5142_v56, %v2748_v28  ;;  %v3005_v28 = vld [vmem:[#allocation10 + $0x10] sm:$0xff] }
0x1520   :  { %v5145_v55 = vpop.eup %3944 }
0x1521   :  { %v5150_v24 = vpop.eup %3946  ;;  %v2765_v13 = vmul.f32 %v5145_v55, %v2749_v57 }
0x1522   :  { %v2766_v4 = vmul.f32 %v5150_v24, %v2750_v51 }
0x1570   :  { %v2776_v17 = vpop.permute.xlu1 %2775 }
0x1571   :  { %v2799_v37 = vmul.f32 %v5123_v22, %v2776_v17  ;;  %v2778_v60 = vpop.permute.xlu0 %2777 }
0x1572   :  { %v2800_v63 = vmul.f32 %v5127_v45, %v2778_v60 }
0x1573   :  { %2815 = vrot.lane.b32.xlu1 %v2799_v37, %s4119_s29  ;;  %v2895_v37 = vld [vmem:[#allocation8] sm:$0xff] }
0x1574   :  { %v2780_v14 = vpop.permute.xlu1 %2779  ;;  %2817 = vrot.lane.b32.xlu0 %v2800_v63, %s4119_s29  ;;  %v3428_v18 = vpack.c.bf16 %v2896_v52, %v2895_v37  ;;  %v3431_v63 = vpack.c.bf16 %v2898_v5, %v2897_v23 }
0x1575   :  { %v2801_v9 = vmul.f32 %v5129_v2, %v2780_v14  ;;  %v2782_v54 = vpop.permute.xlu0 %2781 }
0x1576   :  { %v2802_v20 = vmul.f32 %v5134_v6, %v2782_v54  ;;  %3429 = vmatpush3.bf16.msra.mxu0 %v3428_v18 }
0x1577   :  { %2819 = vrot.lane.b32.xlu1 %v2801_v9, %s4119_s29  ;;  %3430 = vmatprep.subr.bf16.mxu0 %v4115_v0 }
0x1578   :  { %v2784_v8 = vpop.permute.xlu1 %2783  ;;  %2821 = vrot.lane.b32.xlu0 %v2802_v20, %s4119_s29 }
0x1579   :  { %v2803_v49 = vmul.f32 %v5137_v21, %v2784_v8  ;;  %v2786_v29 = vpop.permute.xlu0 %2785 }
0x157a   :  { %v2804_v16 = vmul.f32 %v5142_v56, %v2786_v29  ;;  %3432 = vmatpush3.bf16.msra.mxu0 %v3431_v63 }
0x157b   :  { %2823 = vrot.lane.b32.xlu1 %v2803_v49, %s4119_s29 }
0x157c   :  { %v2788_v1 = vpop.permute.xlu1 %2787  ;;  %2825 = vrot.lane.b32.xlu0 %v2804_v16, %s4119_s29 }
0x157d   :  { %v2805_v61 = vmul.f32 %v5145_v55, %v2788_v1  ;;  %v2790_v47 = vpop.permute.xlu0 %2789 }
0x157e   :  { %v2806_v27 = vmul.f32 %v5150_v24, %v2790_v47 }
0x157f   :  { %2827 = vrot.lane.b32.xlu1 %v2805_v61, %s4119_s29 }
0x1580   :  { %2829 = vrot.lane.b32.xlu0 %v2806_v27, %s4119_s29  ;;  %v3003_v27 = vld [vmem:[#allocation10] sm:$0xff] }
0x15e5   :  { %v2816_v41 = vpop.permute.xlu1 %2815 }
0x15e6   :  { %v2839_v62 = vadd.f32 %v2816_v41, %v2759_v30  ;;  %v2818_v32 = vpop.permute.xlu0 %2817 }
0x15e7   :  { %v2840_v50 = vadd.f32 %v2818_v32, %v2760_v43 }
0x15e8   :  { %3948 = vtanh.f32 %v2839_v62  ;;  %v3434_v62 = vpack.c.bf16 %v3004_v34, %v3003_v27 }
0x15e9   :  { %v2820_v26 = vpop.permute.xlu1 %2819  ;;  %3950 = vtanh.f32 %v2840_v50 }
0x15ea   :  { %v2841_v53 = vadd.f32 %v2820_v26, %v2761_v35  ;;  %v2822_v31 = vpop.permute.xlu0 %2821  ;;  %3435 = vmatpush3.bf16.msra.mxu1 %v3434_v62 }
0x15eb   :  { %v2842_v59 = vadd.f32 %v2822_v31, %v2762_v10  ;;  %3436 = vmatprep.subr.bf16.mxu1 %v4115_v0 }
0x15ec   :  { %3952 = vtanh.f32 %v2841_v53 }
0x15ed   :  { %v2824_v11 = vpop.permute.xlu1 %2823  ;;  %3954 = vtanh.f32 %v2842_v59  ;;  %v3006_v59 = vld [vmem:[#allocation10 + $0x18] sm:$0xff] }
0x15ee   :  { %v2843_v33 = vadd.f32 %v2824_v11, %v2763_v44  ;;  %v2826_v7 = vpop.permute.xlu0 %2825  ;;  %v3437_v11 = vpack.c.bf16 %v3006_v59, %v3005_v28 }
0x15ef   :  { %v2844_v36 = vadd.f32 %v2826_v7, %v2764_v25  ;;  %v3193_v7 = vld [vmem:[%s5224_s7] ss:$0 sm:$0xff] }
0x15f0   :  { %3956 = vtanh.f32 %v2843_v33  ;;  %3438 = vmatpush3.bf16.msra.mxu1 %v3437_v11 }
0x15f1   :  { %v2828_v48 = vpop.permute.xlu1 %2827  ;;  %3958 = vtanh.f32 %v2844_v36 }
0x15f2   :  { %v3949_v38 = vpop.eup %3948  ;;  %v2845_v42 = vadd.f32 %v2828_v48, %v2765_v13  ;;  %v2830_v17 = vpop.permute.xlu0 %2829 }
0x15f3   :  { %2863 = vrot.lane.b32.xlu1 %v3949_v38, %s4118_s3  ;;  %v3951_v12 = vpop.eup %3950  ;;  %v2846_v15 = vadd.f32 %v2830_v17, %v2766_v4 }
0x15f4   :  { %3960 = vtanh.f32 %v2845_v42  ;;  %2865 = vrot.lane.b32.xlu0 %v3951_v12, %s4118_s3 }
0x15f5   :  { %3962 = vtanh.f32 %v2846_v15 }
0x15f6   :  { %v3953_v58 = vpop.eup %3952 }
0x15f7   :  { %2867 = vrot.lane.b32.xlu1 %v3953_v58, %s4118_s3  ;;  %v3955_v40 = vpop.eup %3954 }
0x15f8   :  { %2869 = vrot.lane.b32.xlu0 %v3955_v40, %s4118_s3 }
0x15fa   :  { %v3957_v60 = vpop.eup %3956 }
0x15fb   :  { %2871 = vrot.lane.b32.xlu1 %v3957_v60, %s4118_s3  ;;  %v3959_v14 = vpop.eup %3958 }
0x15fc   :  { %2873 = vrot.lane.b32.xlu0 %v3959_v14, %s4118_s3 }
0x15fe   :  { %v3961_v9 = vpop.eup %3960 }
0x15ff   :  { %2875 = vrot.lane.b32.xlu1 %v3961_v9, %s4118_s3  ;;  %v3963_v54 = vpop.eup %3962 }
0x1600   :  { %2877 = vrot.lane.b32.xlu0 %v3963_v54, %s4118_s3 }
0x1665   :  { %v2864_v20 = vpop.permute.xlu1 %2863 }
0x1666   :  { %v2887_v8 = vmul.f32 %v5123_v22, %v2864_v20  ;;  %v2866_v49 = vpop.permute.xlu0 %2865 }
0x1667   :  { %v2888_v29 = vmul.f32 %v5127_v45, %v2866_v49 }
0x1668   :  { %v2914_v16 = vrot.slane %v2887_v8, 7 }
0x1669   :  { %v2868_v1 = vpop.permute.xlu1 %2867  ;;  %v2915_v47 = vrot.slane %v2888_v29, 6 }
0x166a   :  { %v2889_v61 = vmul.f32 %v5129_v2, %v2868_v1  ;;  %v2870_v30 = vpop.permute.xlu0 %2869 }
0x166b   :  { %v2916_v39 = vsel %vm545_vm2, %v2915_v47, %v2914_v16  ;;  %v2890_v46 = vmul.f32 %v5134_v6, %v2870_v30 }
0x166c   :  { %v2917_v41 = vrot.slane %v2889_v61, 5 }
0x166d   :  { %v2872_v43 = vpop.permute.xlu1 %2871  ;;  %v2919_v45 = vrot.slane %v2890_v46, 4 }
0x166e   :  { %v2918_v22 = vsel %vm548_vm3, %v2917_v41, %v2916_v39  ;;  %v2891_v32 = vmul.f32 %v5137_v21, %v2872_v43  ;;  %v2874_v2 = vpop.permute.xlu0 %2873 }
0x166f   :  { %v2892_v19 = vmul.f32 %v5142_v56, %v2874_v2  ;;  %v2920_v50 = vsel %vm551_vm4, %v2919_v45, %v2918_v22 }
0x1670   :  { %v2921_v35 = vrot.slane %v2891_v32, 3 }
0x1671   :  { %v2876_v26 = vpop.permute.xlu1 %2875  ;;  %v2923_v53 = vrot.slane %v2892_v19, 2 }
0x1672   :  { %v2922_v3 = vsel %vm554_vm5, %v2921_v35, %v2920_v50  ;;  %v2893_v6 = vmul.f32 %v5145_v55, %v2876_v26  ;;  %v2878_v10 = vpop.permute.xlu0 %2877  ;;  %v3191_v55 = vld [vmem:[%s5222_s5] ss:$0 sm:$0xff]  ;;  %s3100_s5 = sshll.u32 %s4120_s24, 4  ;;  %s3101_s5 = int_to_ptr.vmem [resolvable:$true] %s3100_s5 }
0x1673   :  { %v2894_v21 = vmul.f32 %v5150_v24, %v2878_v10  ;;  %v2924_v31 = vsel %vm557_vm6, %v2923_v53, %v2922_v3  ;;  %s4078_s25 = scalar_lea.vmem %s3101_s5, 128  ;;  %p4083_p13 = scmp.lt.s32.totalorder %s3101_s5, %s3101_s5 }
0x1674   :  { %v2925_v38 = vrot.slane %v2893_v6, 1  ;;  %p4079_p12 = scmp.ne.s32.totalorder %s3101_s5, %s4078_s25  ;;  %p4084_p0 = scmp.lt.s32.totalorder %s4078_s25, %s4078_s25 }
0x1676   :  { %v2926_v0 = vsel %vm560_vm7, %v2925_v38, %v2924_v31  ;;  %p4085_p1 = por %p4084_p0, %p4083_p13 }
0x1677   :  { %v2927_v44 = vsel %vm563_vm8, %v2894_v21, %v2926_v0 }
0x1678   :  { %2928 = vrot.lane.b32.xlu1 %v2927_v44, %s4119_s29  ;;  %p4086_p2 = pnand %p4085_p1, %p4079_p12 }
0x16ea   :  { %v2929_v56 = vpop.permute.xlu1 %2928 }
0x16eb   :  { %3366 = vmatmul.mubr.msk.f32.vlgmr.msra.gmra.mrb[14].mxu0 %vm246_vm9, %v2929_v56 }
0x17be   :  { %v2998_v24 = vpop.f32.mrb[14].mxu0 }
0x17bf   :  { %v2999_v57 = vadd.f32 %v3191_v55, %v2998_v24  ;;  %v3367_v33 = vpop.f32.mrb[15].mxu0 }
0x17c1   :  { %v3002_v25 = vmax.f32 %v2999_v57, 0.0 }
0x17c3   :  { %3377 = vmatmul.mubr.msk.f32.vlgmr.msra.gmra.mrb[10].mxu1 %vm246_vm9, %v3002_v25 }
0x1896   :  { %v3083_v13 = vpop.f32.mrb[10].mxu1 }
0x1897   :  { %v3084_v51 = vadd.f32 %v3193_v7, %v3083_v13  ;;  %v3378_v36 = vpop.f32.mrb[11].mxu1 }
0x1899   :  { %v3195_v48 = vmul.f32 -1.442695, %v3084_v51 }
0x189b   :  { %3964 = vpow2.f32 %v3195_v48 }
0x18a5   :  { %v3965_v42 = vpop.eup %3964 }
0x18a6   :  { %v3090_v4 = vadd.f32 1.0, %v3965_v42 }
0x18a8   :  { %3966 = vrcp.f32 %v3090_v4 }
0x18b2   :  { %v3967_v17 = vpop.eup %3966 }
0x18b3   :  { %3093 = vst [vmem:[#allocation11] sm:$0xff] %v3967_v17 }
0x18b4   :  { %4089 = shalt.err (!%p4086_p2)
}
0x18b5   :  { %s4090_s27 = scalar_lea.hbm %s5225_s8, 128 }
0x18b6   :  { %p4091_p3 = scmp.ne.s32.totalorder %s5225_s8, %s4090_s27  ;;  %p4094_p4 = scmp.lt.u32.totalorder %s4090_s27, %s5225_s8 }
0x18b8   :  { %p4096_p5 = pnand %p4094_p4, %p4091_p3 }
0x18ba   :  { %4099 = shalt.err (!%p4096_p5)
}
0x18bb   :  { %3103 = dma.vmem_to_hbm [thread:$0]  %s3101_s5, 128, %s5225_s8, [#allocation4]  }
0x18bc   :  { %4106 = dma.done.wait [#allocation4], 128  }
0x18bd   :  { %4107 = vsyncadd [#allocation4], 4294967168 }
0x18be   :  { %3107 = vsyncpa [#allocation3], 1 }
0x18bf   :  { %3108 = vsyncpa [#allocation6], 1 }
0x18c0   :  { %3109 = vsyncpa [#allocation9], 1 }
0x18c1   :  { %3110 = vsyncpa [#allocation4], 1 }

</bundles_post_ra>
